<compile_context>
chip_gen: v6e
topology: v6e:2x2x1
jax: 0.10.0
libtpu: 0.0.40
codegen_flags: <defaults>
</compile_context>

<pallas_src>
import functools

import numpy as np
import jax
import jax.numpy as jnp
from jax import lax
from jax.experimental import pallas as pl
from jax.experimental.pallas import tpu as pltpu


def _round_up(x, m):
    return (x + m - 1) // m * m


# ----------------------------------------------------------------------------
# In-kernel helpers (pure jnp, traced inside the Pallas kernel)
# ----------------------------------------------------------------------------

def _mm(a, w):
    """2-D matmul on the MXU with f32 accumulation."""
    return jnp.dot(a, w, preferred_element_type=jnp.float32)


def _layer_norm(x, g, b, eps=1e-5):
    mean = jnp.mean(x, axis=-1, keepdims=True)
    var = jnp.mean(jnp.square(x - mean), axis=-1, keepdims=True)
    return (x - mean) * lax.rsqrt(var + eps) * g + b


def _mha(q, k, v, bias, sel, gsum, n_heads):
    """Multi-head attention for one batch via block-diagonal K/V.

    q: (Q, E); k, v: (K, E); bias: (1, K) additive key bias or None;
    sel : (H*K, E)  0/1 constant, 1 where replica(row) == head(col);
    gsum: (H*K, H*K) 0/1 constant, within-head-group summation matrix.
    Three full-width MXU dots replace the old per-(batch, head) micro-matmul
    loop; head outputs land directly lane-concatenated along E.
    """
    E = q.shape[-1]
    dh = E // n_heads
    scale = 1.0 / float(dh) ** 0.5
    k_bd = jnp.concatenate([k] * n_heads, axis=0) * sel        # (H*K, E)
    v_bd = jnp.concatenate([v] * n_heads, axis=0) * sel        # (H*K, E)
    s = lax.dot_general(q, k_bd, (((1,), (1,)), ((), ())),
                        preferred_element_type=jnp.float32) * scale   # (Q, H*K)
    if bias is not None:
        s = s + jnp.concatenate([bias] * n_heads, axis=-1)     # (1, H*K) broadcast
    # Row max shared across head groups: softmax ratios per group are unchanged.
    m = jnp.max(s, axis=-1, keepdims=True)
    p = jnp.exp(s - m)
    denom = _mm(p, gsum)                                       # per-head sum, lane-broadcast
    # approx reciprocal rides the otherwise-idle EUP slot (tiny precision delta).
    p = p * pl.reciprocal(jnp.maximum(denom, 1e-30), approx=True)
    return _mm(p, v_bd)                                        # (Q, E)


# ----------------------------------------------------------------------------
# Fused kernel: image embedding + pos add + decoder stack + heads + blend
# ----------------------------------------------------------------------------

def _fused_kernel(tok_ref, emb_w_ref, emb_b_ref, pos_ref, mem_ref, bias_ref,
                  sel_s_ref, gsum_s_ref, sel_c_ref, gsum_c_ref,
                  blk_ref, head_ref, out_ref, x_vmem, mx_vmem, *,
                  blk_layout, head_layout, n_heads, mask_step, n_blocks,
                  out_ch, n_resid):
    i = pl.program_id(1)                     # decoder-block index ("arbitrary")

    def bw(name):                            # per-block weight: static ref slice
        r0, rows, cols = blk_layout[name]
        return blk_ref[r0:r0 + rows, 0:cols]

    def hw(name):                            # head weight: static ref slice
        r0, rows, cols = head_layout[name]
        return head_ref[r0:r0 + rows, 0:cols]

    # Step 0: fused ImageEmbeddingReweighter (1x1 conv C->E) + positional add.
    @pl.when(i == 0)
    def _():
        x_vmem[...] = _mm(tok_ref[...], emb_w_ref[...]) + emb_b_ref[...] + pos_ref[...]

    x = x_vmem[...]                          # (HW, E) resident carry
    E = x.shape[-1]

    # --- self-attention (fused QKV projection) + residual + LayerNorm -------
    qkv = _mm(x, bw("sa_wqkv")) + bw("sa_bqkv")
    o = _mha(qkv[:, 0:E], qkv[:, E:2 * E], qkv[:, 2 * E:3 * E], None,
             sel_s_ref[...], gsum_s_ref[...], n_heads)
    x = _layer_norm(x + _mm(o, bw("sa_wo")) + bw("sa_bo"), bw("ln1_g"), bw("ln1_b"))

    # --- cross-attention (fused KV projection) + residual + LayerNorm -------
    q = _mm(x, bw("ca_wq")) + bw("ca_bq")
    kv = _mm(mem_ref[...], bw("ca_wkv")) + bw("ca_bkv")
    o = _mha(q, kv[:, 0:E], kv[:, E:2 * E], bias_ref[...],
             sel_c_ref[...], gsum_c_ref[...], n_heads)
    x = _layer_norm(x + _mm(o, bw("ca_wo")) + bw("ca_bo"), bw("ln2_g"), bw("ln2_b"))

    # --- feed-forward (fused relu) + residual + LayerNorm -------------------
    h = jnp.maximum(_mm(x, bw("w1")) + bw("b1"), 0.0)
    x = _layer_norm(x + _mm(h, bw("w2")) + bw("b2"), bw("ln3_g"), bw("ln3_b"))

    x_vmem[...] = x

    @pl.when(i == mask_step)
    def _():
        mx_vmem[...] = x                     # activation feeding MaskBlock

    # Final step: fused MaskBlock + ConvSuperPixelPredictor (block-diag over
    # [x | mask_x]) + masking_sum blend; single lane-dense (HW, 128) store.
    @pl.when(i == n_blocks - 1)
    def _():
        xc = jnp.concatenate([x, mx_vmem[...]], axis=-1)       # (HW, 2E)
        for j in range(n_resid):
            hh = jnp.maximum(_mm(xc, hw("rw1_%d" % j)) + hw("rb1_%d" % j), 0.0)
            xc = xc + _mm(hh, hw("rw2_%d" % j)) + hw("rb2_%d" % j)
        full = _mm(xc, hw("wf")) + hw("bf")                    # (HW, 128)
        logits = full[:, 0:out_ch]
        mask = jax.nn.sigmoid(full[:, out_ch:out_ch + 1])
        # masking_sum: mask * img_new + (1 - mask) * img_h (channels-last)
        blended = mask * logits + (1.0 - mask) * tok_ref[...]
        pad = jnp.zeros((blended.shape[0], full.shape[-1] - (out_ch + 1)),
                        jnp.float32)
        out_ref[...] = jnp.concatenate([blended, mask, pad], axis=-1)


# ----------------------------------------------------------------------------
# Weight-slab packing helpers (wrapper side, plain XLA)
# ----------------------------------------------------------------------------

def _block_param_entries(E, F):
    return (
        ("sa_wqkv", E, 3 * E), ("sa_bqkv", 1, 3 * E),
        ("sa_wo", E, E), ("sa_bo", 1, E),
        ("ca_wq", E, E), ("ca_bq", 1, E),
        ("ca_wkv", E, 2 * E), ("ca_bkv", 1, 2 * E),
        ("ca_wo", E, E), ("ca_bo", 1, E),
        ("ln1_g", 1, E), ("ln1_b", 1, E),
        ("ln2_g", 1, E), ("ln2_b", 1, E),
        ("ln3_g", 1, E), ("ln3_b", 1, E),
        ("w1", E, F), ("b1", 1, F),
        ("w2", F, E), ("b2", 1, E),
    )


def _make_layout(entries):
    """Rows padded to multiples of 8 (aligned sublane slices); width to 128."""
    layout, r, width = {}, 0, 0
    for name, rows, cols in entries:
        layout[name] = (r, rows, cols)
        r += _round_up(rows, 8)
        width = max(width, cols)
    return layout, _round_up(r, 8), _round_up(width, 128)


def _pack_slab(arrs, entries, layout, rows, width, leading=None):
    shape = (leading, rows, width) if leading is not None else (rows, width)
    slab = jnp.zeros(shape, jnp.float32)
    for name, r, c in entries:
        r0 = layout[name][0]
        a = arrs[name].astype(jnp.float32)
        if leading is not None:
            slab = slab.at[:, r0:r0 + r, 0:c].set(a)
        else:
            slab = slab.at[r0:r0 + r, 0:c].set(a)
    return slab


def _block_diag(a, b):
    ra, ca = a.shape
    rb, cb = b.shape
    out = jnp.zeros((ra + rb, ca + cb), jnp.float32)
    out = out.at[:ra, :ca].set(a.astype(jnp.float32))
    out = out.at[ra:, ca:].set(b.astype(jnp.float32))
    return out


def _mha_consts(n_heads, K, E):
    """Constant block-diagonal selection and group-sum matrices (numpy)."""
    dh = E // n_heads
    row_g = np.arange(n_heads * K)[:, None] // K
    sel = (row_g == (np.arange(E)[None, :] // dh)).astype(np.float32)
    gsum = (row_g == row_g.T).astype(np.float32)
    return jnp.asarray(sel), jnp.asarray(gsum)


# ----------------------------------------------------------------------------
# Forward wrapper
# ----------------------------------------------------------------------------

def text_rebuild_forward(params, img_h, txt_h, txt_pad_mask, *,
                         n_heads=4, num_trd_block_for_mask=3):
    """img_h: (B, C, H, W); txt_h: (S, B, E); txt_pad_mask: (B, S), 0 = ignore."""
    B, C, H, W = img_h.shape
    S, _, E = txt_h.shape
    HW = H * W
    nb = params["sa_wqkv"].shape[0]
    F = params["w1"].shape[-1]
    n_resid = params["m_rw1"].shape[0]
    hid = params["m_rw1"].shape[-1]
    assert nb >= num_trd_block_for_mask
    assert E % n_heads == 0
    assert params["pos_emb"].shape[0] >= HW, "n_img_hidden_positions must cover H*W"

    f32 = jnp.float32
    tok = img_h.transpose(0, 2, 3, 1).reshape(B, HW, C).astype(f32)   # channels-last tokens
    mem = txt_h.transpose(1, 0, 2).astype(f32)                        # (B, S, E)
    # PyTorch: key_padding_mask = (1 - txt_pad_mask).bool(); mask==0 -> ignore.
    # -1e9 (not -inf) so a fully-masked row stays finite (uniform attention).
    bias = jnp.where(txt_pad_mask == 0, jnp.float32(-1e9),
                     jnp.float32(0.0)).reshape(B, 1, S).astype(f32)
    pos = params["pos_emb"][:HW].astype(f32)                          # (HW, E)

    # Hoisted attention constants (self-attn: K=HW, cross-attn: K=S).
    sel_s, gsum_s = _mha_consts(n_heads, HW, E)
    sel_c, gsum_c = _mha_consts(n_heads, S, E)

    # Per-decoder-block weights -> one (nb, R, 128k) slab (1 DMA per grid step).
    blk_entries = _block_param_entries(E, F)
    blk_layout, blk_rows, blk_w = _make_layout(blk_entries)
    blk_slab = _pack_slab(params, blk_entries, blk_layout, blk_rows, blk_w,
                          leading=nb)

    # MaskBlock + ConvSuperPixelPredictor fused as block-diagonal residual
    # stacks over [x | mask_x]; final projection padded to 128 output lanes.
    out_w = _round_up(C + 1, 128)
    head_arrs, head_entries = {}, []
    for j in range(n_resid):
        head_arrs["rw1_%d" % j] = _block_diag(params["l_rw1"][j], params["m_rw1"][j])
        head_entries.append(("rw1_%d" % j, 2 * E, 2 * hid))
        head_arrs["rb1_%d" % j] = jnp.concatenate(
            [params["l_rb1"][j], params["m_rb1"][j]], axis=-1).astype(f32)
        head_entries.append(("rb1_%d" % j, 1, 2 * hid))
        head_arrs["rw2_%d" % j] = _block_diag(params["l_rw2"][j], params["m_rw2"][j])
        head_entries.append(("rw2_%d" % j, 2 * hid, 2 * E))
        head_arrs["rb2_%d" % j] = jnp.concatenate(
            [params["l_rb2"][j], params["m_rb2"][j]], axis=-1).astype(f32)
        head_entries.append(("rb2_%d" % j, 1, 2 * E))
    wf_bd = _block_diag(params["l_wf"], params["m_wf"])               # (2E, C+1)
    bf_bd = jnp.concatenate([params["l_bf"], params["m_bf"]], axis=-1).astype(f32)
    head_arrs["wf"] = jnp.zeros((2 * E, out_w), f32).at[:, :C + 1].set(wf_bd)
    head_entries.append(("wf", 2 * E, out_w))
    head_arrs["bf"] = jnp.zeros((1, out_w), f32).at[:, :C + 1].set(bf_bd)
    head_entries.append(("bf", 1, out_w))
    head_layout, head_rows, head_w = _make_layout(head_entries)
    head_slab = _pack_slab(head_arrs, head_entries, head_layout, head_rows, head_w)

    kernel = functools.partial(
        _fused_kernel,
        blk_layout=blk_layout, head_layout=head_layout, n_heads=n_heads,
        mask_step=num_trd_block_for_mask - 1, n_blocks=nb, out_ch=C,
        n_resid=n_resid)

    out_packed = pl.pallas_call(
        kernel,
        out_shape=jax.ShapeDtypeStruct((B, HW, out_w), f32),
        grid=(B, nb),
        in_specs=[
            pl.BlockSpec((None, HW, C), lambda b, i: (b, 0, 0)),       # img tokens
            pl.BlockSpec((C, E), lambda b, i: (0, 0)),                 # emb_w
            pl.BlockSpec((1, E), lambda b, i: (0, 0)),                 # emb_b
            pl.BlockSpec((HW, E), lambda b, i: (0, 0)),                # pos emb
            pl.BlockSpec((None, S, E), lambda b, i: (b, 0, 0)),        # text memory
            pl.BlockSpec((None, 1, S), lambda b, i: (b, 0, 0)),        # key-pad bias
            pl.BlockSpec(sel_s.shape, lambda b, i: (0, 0)),            # self-attn sel
            pl.BlockSpec(gsum_s.shape, lambda b, i: (0, 0)),           # self-attn gsum
            pl.BlockSpec(sel_c.shape, lambda b, i: (0, 0)),            # cross-attn sel
            pl.BlockSpec(gsum_c.shape, lambda b, i: (0, 0)),           # cross-attn gsum
            pl.BlockSpec((None, blk_rows, blk_w), lambda b, i: (i, 0, 0)),  # block slab
            pl.BlockSpec((head_rows, head_w), lambda b, i: (0, 0)),    # heads slab
        ],
        out_specs=pl.BlockSpec((None, HW, out_w), lambda b, i: (b, 0, 0)),
        scratch_shapes=[pltpu.VMEM((HW, E), f32),    # activation carry
                        pltpu.VMEM((HW, E), f32)],   # mask-step capture
        compiler_params=pltpu.CompilerParams(
            # batch axis -> 2nd TensorCore on v7x; block axis is the carry.
            dimension_semantics=("parallel", "arbitrary"),
            vmem_limit_bytes=48 * 1024 * 1024),
    )(tok, params["emb_w"].astype(f32), params["emb_b"].astype(f32), pos, mem,
      bias, sel_s, gsum_s, sel_c, gsum_c, blk_slab, head_slab)

    blended = out_packed[:, :, :C].reshape(B, H, W, C).transpose(0, 3, 1, 2)
    mask_img = out_packed[:, :, C].reshape(B, 1, H, W)
    return blended, mask_img


# ----------------------------------------------------------------------------
# Deterministic parameter initialization (shapes implied by __init__)
# ----------------------------------------------------------------------------

def init_params(key, C, E, n_heads, F, n_blocks, n_pos, n_resid=2):
    keys = iter(jax.random.split(key, 128))

    def rnd(shape, scale=0.05):
        return jax.random.normal(next(keys), shape, jnp.float32) * scale

    hid = E // 2
    params = dict(
        emb_w=rnd((C, E)), emb_b=rnd((1, E)),
        pos_emb=rnd((n_pos, E)),
        # per-decoder-block weights stacked on a leading axis (packed + streamed)
        sa_wqkv=rnd((n_blocks, E, 3 * E)), sa_bqkv=rnd((n_blocks, 1, 3 * E)),
        sa_wo=rnd((n_blocks, E, E)), sa_bo=rnd((n_blocks, 1, E)),
        ca_wq=rnd((n_blocks, E, E)), ca_bq=rnd((n_blocks, 1, E)),
        ca_wkv=rnd((n_blocks, E, 2 * E)), ca_bkv=rnd((n_blocks, 1, 2 * E)),
        ca_wo=rnd((n_blocks, E, E)), ca_bo=rnd((n_blocks, 1, E)),
        ln1_g=jnp.ones((n_blocks, 1, E), jnp.float32),
        ln1_b=jnp.zeros((n_blocks, 1, E), jnp.float32),
        ln2_g=jnp.ones((n_blocks, 1, E), jnp.float32),
        ln2_b=jnp.zeros((n_blocks, 1, E), jnp.float32),
        ln3_g=jnp.ones((n_blocks, 1, E), jnp.float32),
        ln3_b=jnp.zeros((n_blocks, 1, E), jnp.float32),
        w1=rnd((n_blocks, E, F)), b1=rnd((n_blocks, 1, F)),
        w2=rnd((n_blocks, F, E)), b2=rnd((n_blocks, 1, E)),
        # MaskBlock (-> 1 channel, sigmoid)
        m_rw1=rnd((n_resid, E, hid)), m_rb1=rnd((n_resid, 1, hid)),
        m_rw2=rnd((n_resid, hid, E)), m_rb2=rnd((n_resid, 1, E)),
        m_wf=rnd((E, 1)), m_bf=rnd((1, 1)),
        # ConvSuperPixelPredictor (-> C channels)
        l_rw1=rnd((n_resid, E, hid)), l_rb1=rnd((n_resid, 1, hid)),
        l_rw2=rnd((n_resid, hid, E)), l_rb2=rnd((n_resid, 1, E)),
        l_wf=rnd((E, C)), l_bf=rnd((1, C)),
    )
    return params


# ----------------------------------------------------------------------------
# Main
# ----------------------------------------------------------------------------

if __name__ == "__main__":
    key = jax.random.PRNGKey(0)
    B, C, H, W = 2, 8, 4, 4          # img_hidden_dim = 8
    E, S = 32, 8                     # txt_hidden_dim = 32, seq_len = 8
    n_heads, F = 4, 64               # n_attn_heads = 4, linear_hidden_dim = 64
    n_blocks, n_mask = 4, 3

    k1, k2, k3, kp = jax.random.split(key, 4)
    img_h = jax.random.normal(k1, (B, C, H, W), jnp.float32)
    txt_h = jax.random.normal(k2, (S, B, E), jnp.float32)
    txt_pad_mask = (jax.random.uniform(k3, (B, S)) > 0.3).astype(jnp.float32)
    txt_pad_mask = txt_pad_mask.at[:, 0].set(1.0)   # guarantee >=1 valid token

    params = init_params(kp, C, E, n_heads, F, n_blocks, n_pos=64)

    fwd = jax.jit(functools.partial(text_rebuild_forward,
                                    n_heads=n_heads,
                                    num_trd_block_for_mask=n_mask))
    out, mask_img = fwd(params, img_h, txt_h, txt_pad_mask)
    jax.block_until_ready((out, mask_img))

    assert out.shape == (B, C, H, W)
    assert mask_img.shape == (B, 1, H, W)
    assert bool(jnp.all(jnp.isfinite(out))) and bool(jnp.all(jnp.isfinite(mask_img)))
    print("KERNEL_OK")
</pallas_src>

<mosaic_0001>
module attributes {stable_mosaic.version = 11 : i64} {
  func.func @_fused_kernel(%arg0: i32, %arg1: i32, %arg2: memref<1x16x8xf32, #tpu.memory_space<vmem>>, %arg3: memref<8x32xf32, #tpu.memory_space<vmem>>, %arg4: memref<1x32xf32, #tpu.memory_space<vmem>>, %arg5: memref<16x32xf32, #tpu.memory_space<vmem>>, %arg6: memref<1x8x32xf32, #tpu.memory_space<vmem>>, %arg7: memref<1x1x8xf32, #tpu.memory_space<vmem>>, %arg8: memref<64x32xf32, #tpu.memory_space<vmem>>, %arg9: memref<64x64xf32, #tpu.memory_space<vmem>>, %arg10: memref<32x32xf32, #tpu.memory_space<vmem>>, %arg11: memref<32x32xf32, #tpu.memory_space<vmem>>, %arg12: memref<1x360x128xf32, #tpu.memory_space<vmem>>, %arg13: memref<296x128xf32, #tpu.memory_space<vmem>>, %arg14: memref<1x16x128xf32, #tpu.memory_space<vmem>>, %arg15: memref<16x32xf32, #tpu.memory_space<vmem>>, %arg16: memref<16x32xf32, #tpu.memory_space<vmem>>) attributes {dimension_semantics = [#tpu.dimension_semantics<parallel>, #tpu.dimension_semantics<arbitrary>], iteration_bounds = array<i64: 2, 4>, scalar_prefetch = 0 : i64, scratch_operands = 2 : i64, tpu.core_type = #tpu.core_type<tc>, window_params = [{transform_indices = @transform_0, window_bounds = array<i64: 1, 16, 8>}, {pipeline_mode = #tpu.pipeline_mode<synchronous>, transform_indices = @transform_1, window_bounds = array<i64: 8, 32>}, {pipeline_mode = #tpu.pipeline_mode<synchronous>, transform_indices = @transform_2, window_bounds = array<i64: 1, 32>}, {pipeline_mode = #tpu.pipeline_mode<synchronous>, transform_indices = @transform_3, window_bounds = array<i64: 16, 32>}, {transform_indices = @transform_4, window_bounds = array<i64: 1, 8, 32>}, {transform_indices = @transform_5, window_bounds = array<i64: 1, 1, 8>}, {pipeline_mode = #tpu.pipeline_mode<synchronous>, transform_indices = @transform_6, window_bounds = array<i64: 64, 32>}, {pipeline_mode = #tpu.pipeline_mode<synchronous>, transform_indices = @transform_7, window_bounds = array<i64: 64, 64>}, {pipeline_mode = #tpu.pipeline_mode<synchronous>, transform_indices = @transform_8, window_bounds = array<i64: 32, 32>}, {pipeline_mode = #tpu.pipeline_mode<synchronous>, transform_indices = @transform_9, window_bounds = array<i64: 32, 32>}, {transform_indices = @transform_10, window_bounds = array<i64: 1, 360, 128>}, {pipeline_mode = #tpu.pipeline_mode<synchronous>, transform_indices = @transform_11, window_bounds = array<i64: 296, 128>}, {transform_indices = @transform_12, window_bounds = array<i64: 1, 16, 128>}]} {
    %c0_i32 = arith.constant 0 : i32
    %0 = arith.cmpi eq, %arg1, %c0_i32 : i32
    %1 = arith.extui %0 : i1 to i32
    %c0_i32_0 = arith.constant 0 : i32
    %2 = arith.cmpi ne, %1, %c0_i32_0 : i32
    scf.if %2 {
      %c0_95 = arith.constant 0 : index
      %c0_96 = arith.constant 0 : index
      %c0_97 = arith.constant 0 : index
      %195 = vector.load %arg2[%c0_95, %c0_96, %c0_97] : memref<1x16x8xf32, #tpu.memory_space<vmem>>, vector<1x16x8xf32>
      %196 = vector.shape_cast %195 : vector<1x16x8xf32> to vector<16x8xf32>
      %c0_98 = arith.constant 0 : index
      %c0_99 = arith.constant 0 : index
      %197 = vector.load %arg3[%c0_98, %c0_99] : memref<8x32xf32, #tpu.memory_space<vmem>>, vector<8x32xf32>
      %cst_100 = arith.constant dense<0.000000e+00> : vector<16x32xf32>
      %198 = tpu.matmul %196, %197, %cst_100 {dimension_numbers = #tpu.dot_dimension_numbers<[1], [0], [0], [1], [0, 0, 1, 1], [], []>} : vector<16x8xf32>, vector<8x32xf32>, vector<16x32xf32> -> vector<16x32xf32>
      %c0_101 = arith.constant 0 : index
      %c0_102 = arith.constant 0 : index
      %199 = vector.load %arg4[%c0_101, %c0_102] : memref<1x32xf32, #tpu.memory_space<vmem>>, vector<1x32xf32>
      %200 = vector.broadcast %199 : vector<1x32xf32> to vector<16x32xf32>
      %201 = arith.addf %198, %200 : vector<16x32xf32>
      %c0_103 = arith.constant 0 : index
      %c0_104 = arith.constant 0 : index
      %202 = vector.load %arg5[%c0_103, %c0_104] : memref<16x32xf32, #tpu.memory_space<vmem>>, vector<16x32xf32>
      %203 = arith.addf %201, %202 : vector<16x32xf32>
      %c0_105 = arith.constant 0 : index
      %c0_106 = arith.constant 0 : index
      %204 = vector.load %arg15[%c0_105, %c0_106] : memref<16x32xf32, #tpu.memory_space<vmem>>, vector<16x32xf32>
      tpu.vector_store %arg15[%c0_105, %c0_106], %203 {strides = array<i32>} : memref<16x32xf32, #tpu.memory_space<vmem>>, vector<16x32xf32>,
    } else {
    }
    %c0 = arith.constant 0 : index
    %c0_1 = arith.constant 0 : index
    %3 = vector.load %arg15[%c0, %c0_1] : memref<16x32xf32, #tpu.memory_space<vmem>>, vector<16x32xf32>
    %c0_2 = arith.constant 0 : index
    %c0_3 = arith.constant 0 : index
    %c0_4 = arith.constant 0 : index
    %4 = vector.load %arg12[%c0_2, %c0_3, %c0_4] : memref<1x360x128xf32, #tpu.memory_space<vmem>>, vector<1x32x96xf32>
    %5 = vector.shape_cast %4 : vector<1x32x96xf32> to vector<32x96xf32>
    %cst = arith.constant dense<0.000000e+00> : vector<16x96xf32>
    %6 = tpu.matmul %3, %5, %cst {dimension_numbers = #tpu.dot_dimension_numbers<[1], [0], [0], [1], [0, 0, 1, 1], [], []>} : vector<16x32xf32>, vector<32x96xf32>, vector<16x96xf32> -> vector<16x96xf32>
    %c0_5 = arith.constant 0 : index
    %c32 = arith.constant 32 : index
    %c0_6 = arith.constant 0 : index
    %7 = vector.load %arg12[%c0_5, %c32, %c0_6] : memref<1x360x128xf32, #tpu.memory_space<vmem>>, vector<1x1x96xf32>
    %8 = vector.shape_cast %7 : vector<1x1x96xf32> to vector<1x96xf32>
    %9 = vector.broadcast %8 : vector<1x96xf32> to vector<16x96xf32>
    %10 = arith.addf %6, %9 : vector<16x96xf32>
    %11 = vector.extract_strided_slice %10 {offsets = [0, 0], sizes = [16, 32], strides = [1, 1]} : vector<16x96xf32> to vector<16x32xf32>
    %12 = vector.extract_strided_slice %10 {offsets = [0, 32], sizes = [16, 32], strides = [1, 1]} : vector<16x96xf32> to vector<16x32xf32>
    %13 = vector.extract_strided_slice %10 {offsets = [0, 64], sizes = [16, 32], strides = [1, 1]} : vector<16x96xf32> to vector<16x32xf32>
    %c0_7 = arith.constant 0 : index
    %c0_8 = arith.constant 0 : index
    %14 = vector.load %arg8[%c0_7, %c0_8] : memref<64x32xf32, #tpu.memory_space<vmem>>, vector<64x32xf32>
    %c0_9 = arith.constant 0 : index
    %c0_10 = arith.constant 0 : index
    %15 = vector.load %arg9[%c0_9, %c0_10] : memref<64x64xf32, #tpu.memory_space<vmem>>, vector<64x64xf32>
    %16 = tpu.concatenate %12, %12, %12, %12 in 0 : vector<16x32xf32>, vector<16x32xf32>, vector<16x32xf32>, vector<16x32xf32> -> vector<64x32xf32>
    %17 = arith.mulf %16, %14 : vector<64x32xf32>
    %18 = tpu.concatenate %13, %13, %13, %13 in 0 : vector<16x32xf32>, vector<16x32xf32>, vector<16x32xf32>, vector<16x32xf32> -> vector<64x32xf32>
    %19 = arith.mulf %18, %14 : vector<64x32xf32>
    %cst_11 = arith.constant dense<0.000000e+00> : vector<16x64xf32>
    %20 = tpu.matmul %11, %17, %cst_11 {dimension_numbers = #tpu.dot_dimension_numbers<[1], [1], [0], [0], [0, 0, 1, 0], [], []>} : vector<16x32xf32>, vector<64x32xf32>, vector<16x64xf32> -> vector<16x64xf32>
    %cst_12 = arith.constant 0.353553385 : f32
    %21 = vector.broadcast %cst_12 : f32 to vector<16x64xf32>
    %22 = arith.mulf %20, %21 : vector<16x64xf32>
    %cst_13 = arith.constant dense<0xFF800000> : vector<16xf32>
    %23 = vector.multi_reduction <maximumf>, %22, %cst_13 [1] : vector<16x64xf32> to vector<16xf32>
    %24 = vector.shape_cast %23 : vector<16xf32> to vector<16x1xf32>
    %25 = vector.broadcast %24 : vector<16x1xf32> to vector<16x64xf32>
    %26 = arith.subf %22, %25 : vector<16x64xf32>
    %27 = math.exp %26 : vector<16x64xf32>
    %cst_14 = arith.constant dense<0.000000e+00> : vector<16x64xf32>
    %28 = tpu.matmul %27, %15, %cst_14 {dimension_numbers = #tpu.dot_dimension_numbers<[1], [0], [0], [1], [0, 0, 1, 1], [], []>} : vector<16x64xf32>, vector<64x64xf32>, vector<16x64xf32> -> vector<16x64xf32>
    %cst_15 = arith.constant 1.000000e-30 : f32
    %29 = vector.broadcast %cst_15 : f32 to vector<16x64xf32>
    %30 = arith.maximumf %28, %29 : vector<16x64xf32>
    %31 = tpu.reciprocal %30 {approx = true} : vector<16x64xf32> -> vector<16x64xf32>
    %32 = arith.mulf %27, %31 : vector<16x64xf32>
    %cst_16 = arith.constant dense<0.000000e+00> : vector<16x32xf32>
    %33 = tpu.matmul %32, %19, %cst_16 {dimension_numbers = #tpu.dot_dimension_numbers<[1], [0], [0], [1], [0, 0, 1, 1], [], []>} : vector<16x64xf32>, vector<64x32xf32>, vector<16x32xf32> -> vector<16x32xf32>
    %c0_17 = arith.constant 0 : index
    %c40 = arith.constant 40 : index
    %c0_18 = arith.constant 0 : index
    %34 = vector.load %arg12[%c0_17, %c40, %c0_18] : memref<1x360x128xf32, #tpu.memory_space<vmem>>, vector<1x32x32xf32>
    %35 = vector.shape_cast %34 : vector<1x32x32xf32> to vector<32x32xf32>
    %cst_19 = arith.constant dense<0.000000e+00> : vector<16x32xf32>
    %36 = tpu.matmul %33, %35, %cst_19 {dimension_numbers = #tpu.dot_dimension_numbers<[1], [0], [0], [1], [0, 0, 1, 1], [], []>} : vector<16x32xf32>, vector<32x32xf32>, vector<16x32xf32> -> vector<16x32xf32>
    %37 = arith.addf %3, %36 : vector<16x32xf32>
    %c0_20 = arith.constant 0 : index
    %c72 = arith.constant 72 : index
    %c0_21 = arith.constant 0 : index
    %38 = vector.load %arg12[%c0_20, %c72, %c0_21] : memref<1x360x128xf32, #tpu.memory_space<vmem>>, vector<1x1x32xf32>
    %39 = vector.shape_cast %38 : vector<1x1x32xf32> to vector<1x32xf32>
    %40 = vector.broadcast %39 : vector<1x32xf32> to vector<16x32xf32>
    %41 = arith.addf %37, %40 : vector<16x32xf32>
    %c0_22 = arith.constant 0 : index
    %c200 = arith.constant 200 : index
    %c0_23 = arith.constant 0 : index
    %42 = vector.load %arg12[%c0_22, %c200, %c0_23] : memref<1x360x128xf32, #tpu.memory_space<vmem>>, vector<1x1x32xf32>
    %43 = vector.shape_cast %42 : vector<1x1x32xf32> to vector<1x32xf32>
    %c0_24 = arith.constant 0 : index
    %c208 = arith.constant 208 : index
    %c0_25 = arith.constant 0 : index
    %44 = vector.load %arg12[%c0_24, %c208, %c0_25] : memref<1x360x128xf32, #tpu.memory_space<vmem>>, vector<1x1x32xf32>
    %45 = vector.shape_cast %44 : vector<1x1x32xf32> to vector<1x32xf32>
    %cst_26 = arith.constant dense<0.000000e+00> : vector<16xf32>
    %46 = vector.multi_reduction <add>, %41, %cst_26 [1] : vector<16x32xf32> to vector<16xf32>
    %47 = vector.shape_cast %46 : vector<16xf32> to vector<16x1xf32>
    %cst_27 = arith.constant 3.200000e+01 : f32
    %48 = vector.broadcast %cst_27 : f32 to vector<16x1xf32>
    %49 = arith.divf %47, %48 : vector<16x1xf32>
    %50 = vector.broadcast %49 : vector<16x1xf32> to vector<16x32xf32>
    %51 = arith.subf %41, %50 : vector<16x32xf32>
    %52 = arith.mulf %51, %51 : vector<16x32xf32>
    %cst_28 = arith.constant dense<0.000000e+00> : vector<16xf32>
    %53 = vector.multi_reduction <add>, %52, %cst_28 [1] : vector<16x32xf32> to vector<16xf32>
    %54 = vector.shape_cast %53 : vector<16xf32> to vector<16x1xf32>
    %cst_29 = arith.constant 3.200000e+01 : f32
    %55 = vector.broadcast %cst_29 : f32 to vector<16x1xf32>
    %56 = arith.divf %54, %55 : vector<16x1xf32>
    %57 = vector.broadcast %49 : vector<16x1xf32> to vector<16x32xf32>
    %58 = arith.subf %41, %57 : vector<16x32xf32>
    %cst_30 = arith.constant 9.99999974E-6 : f32
    %59 = vector.broadcast %cst_30 : f32 to vector<16x1xf32>
    %60 = arith.addf %56, %59 : vector<16x1xf32>
    %61 = math.rsqrt %60 : vector<16x1xf32>
    %62 = vector.broadcast %61 : vector<16x1xf32> to vector<16x32xf32>
    %63 = arith.mulf %58, %62 : vector<16x32xf32>
    %64 = vector.broadcast %43 : vector<1x32xf32> to vector<16x32xf32>
    %65 = arith.mulf %63, %64 : vector<16x32xf32>
    %66 = vector.broadcast %45 : vector<1x32xf32> to vector<16x32xf32>
    %67 = arith.addf %65, %66 : vector<16x32xf32>
    %c0_31 = arith.constant 0 : index
    %c80 = arith.constant 80 : index
    %c0_32 = arith.constant 0 : index
    %68 = vector.load %arg12[%c0_31, %c80, %c0_32] : memref<1x360x128xf32, #tpu.memory_space<vmem>>, vector<1x32x32xf32>
    %69 = vector.shape_cast %68 : vector<1x32x32xf32> to vector<32x32xf32>
    %cst_33 = arith.constant dense<0.000000e+00> : vector<16x32xf32>
    %70 = tpu.matmul %67, %69, %cst_33 {dimension_numbers = #tpu.dot_dimension_numbers<[1], [0], [0], [1], [0, 0, 1, 1], [], []>} : vector<16x32xf32>, vector<32x32xf32>, vector<16x32xf32> -> vector<16x32xf32>
    %c0_34 = arith.constant 0 : index
    %c112 = arith.constant 112 : index
    %c0_35 = arith.constant 0 : index
    %71 = vector.load %arg12[%c0_34, %c112, %c0_35] : memref<1x360x128xf32, #tpu.memory_space<vmem>>, vector<1x1x32xf32>
    %72 = vector.shape_cast %71 : vector<1x1x32xf32> to vector<1x32xf32>
    %73 = vector.broadcast %72 : vector<1x32xf32> to vector<16x32xf32>
    %74 = arith.addf %70, %73 : vector<16x32xf32>
    %c0_36 = arith.constant 0 : index
    %c0_37 = arith.constant 0 : index
    %c0_38 = arith.constant 0 : index
    %75 = vector.load %arg6[%c0_36, %c0_37, %c0_38] : memref<1x8x32xf32, #tpu.memory_space<vmem>>, vector<1x8x32xf32>
    %76 = vector.shape_cast %75 : vector<1x8x32xf32> to vector<8x32xf32>
    %c0_39 = arith.constant 0 : index
    %c120 = arith.constant 120 : index
    %c0_40 = arith.constant 0 : index
    %77 = vector.load %arg12[%c0_39, %c120, %c0_40] : memref<1x360x128xf32, #tpu.memory_space<vmem>>, vector<1x32x64xf32>
    %78 = vector.shape_cast %77 : vector<1x32x64xf32> to vector<32x64xf32>
    %cst_41 = arith.constant dense<0.000000e+00> : vector<8x64xf32>
    %79 = tpu.matmul %76, %78, %cst_41 {dimension_numbers = #tpu.dot_dimension_numbers<[1], [0], [0], [1], [0, 0, 1, 1], [], []>} : vector<8x32xf32>, vector<32x64xf32>, vector<8x64xf32> -> vector<8x64xf32>
    %c0_42 = arith.constant 0 : index
    %c152 = arith.constant 152 : index
    %c0_43 = arith.constant 0 : index
    %80 = vector.load %arg12[%c0_42, %c152, %c0_43] : memref<1x360x128xf32, #tpu.memory_space<vmem>>, vector<1x1x64xf32>
    %81 = vector.shape_cast %80 : vector<1x1x64xf32> to vector<1x64xf32>
    %82 = vector.broadcast %81 : vector<1x64xf32> to vector<8x64xf32>
    %83 = arith.addf %79, %82 : vector<8x64xf32>
    %84 = vector.extract_strided_slice %83 {offsets = [0, 0], sizes = [8, 32], strides = [1, 1]} : vector<8x64xf32> to vector<8x32xf32>
    %85 = vector.extract_strided_slice %83 {offsets = [0, 32], sizes = [8, 32], strides = [1, 1]} : vector<8x64xf32> to vector<8x32xf32>
    %c0_44 = arith.constant 0 : index
    %c0_45 = arith.constant 0 : index
    %c0_46 = arith.constant 0 : index
    %86 = vector.load %arg7[%c0_44, %c0_45, %c0_46] : memref<1x1x8xf32, #tpu.memory_space<vmem>>, vector<1x1x8xf32>
    %87 = vector.shape_cast %86 : vector<1x1x8xf32> to vector<1x8xf32>
    %c0_47 = arith.constant 0 : index
    %c0_48 = arith.constant 0 : index
    %88 = vector.load %arg10[%c0_47, %c0_48] : memref<32x32xf32, #tpu.memory_space<vmem>>, vector<32x32xf32>
    %c0_49 = arith.constant 0 : index
    %c0_50 = arith.constant 0 : index
    %89 = vector.load %arg11[%c0_49, %c0_50] : memref<32x32xf32, #tpu.memory_space<vmem>>, vector<32x32xf32>
    %90 = tpu.concatenate %84, %84, %84, %84 in 0 : vector<8x32xf32>, vector<8x32xf32>, vector<8x32xf32>, vector<8x32xf32> -> vector<32x32xf32>
    %91 = arith.mulf %90, %88 : vector<32x32xf32>
    %92 = tpu.concatenate %85, %85, %85, %85 in 0 : vector<8x32xf32>, vector<8x32xf32>, vector<8x32xf32>, vector<8x32xf32> -> vector<32x32xf32>
    %93 = arith.mulf %92, %88 : vector<32x32xf32>
    %cst_51 = arith.constant dense<0.000000e+00> : vector<16x32xf32>
    %94 = tpu.matmul %74, %91, %cst_51 {dimension_numbers = #tpu.dot_dimension_numbers<[1], [1], [0], [0], [0, 0, 1, 0], [], []>} : vector<16x32xf32>, vector<32x32xf32>, vector<16x32xf32> -> vector<16x32xf32>
    %cst_52 = arith.constant 0.353553385 : f32
    %95 = vector.broadcast %cst_52 : f32 to vector<16x32xf32>
    %96 = arith.mulf %94, %95 : vector<16x32xf32>
    %97 = tpu.concatenate %87, %87, %87, %87 in 1 : vector<1x8xf32>, vector<1x8xf32>, vector<1x8xf32>, vector<1x8xf32> -> vector<1x32xf32>
    %98 = vector.broadcast %97 : vector<1x32xf32> to vector<16x32xf32>
    %99 = arith.addf %96, %98 : vector<16x32xf32>
    %cst_53 = arith.constant dense<0xFF800000> : vector<16xf32>
    %100 = vector.multi_reduction <maximumf>, %99, %cst_53 [1] : vector<16x32xf32> to vector<16xf32>
    %101 = vector.shape_cast %100 : vector<16xf32> to vector<16x1xf32>
    %102 = vector.broadcast %101 : vector<16x1xf32> to vector<16x32xf32>
    %103 = arith.subf %99, %102 : vector<16x32xf32>
    %104 = math.exp %103 : vector<16x32xf32>
    %cst_54 = arith.constant dense<0.000000e+00> : vector<16x32xf32>
    %105 = tpu.matmul %104, %89, %cst_54 {dimension_numbers = #tpu.dot_dimension_numbers<[1], [0], [0], [1], [0, 0, 1, 1], [], []>} : vector<16x32xf32>, vector<32x32xf32>, vector<16x32xf32> -> vector<16x32xf32>
    %cst_55 = arith.constant 1.000000e-30 : f32
    %106 = vector.broadcast %cst_55 : f32 to vector<16x32xf32>
    %107 = arith.maximumf %105, %106 : vector<16x32xf32>
    %108 = tpu.reciprocal %107 {approx = true} : vector<16x32xf32> -> vector<16x32xf32>
    %109 = arith.mulf %104, %108 : vector<16x32xf32>
    %cst_56 = arith.constant dense<0.000000e+00> : vector<16x32xf32>
    %110 = tpu.matmul %109, %93, %cst_56 {dimension_numbers = #tpu.dot_dimension_numbers<[1], [0], [0], [1], [0, 0, 1, 1], [], []>} : vector<16x32xf32>, vector<32x32xf32>, vector<16x32xf32> -> vector<16x32xf32>
    %c0_57 = arith.constant 0 : index
    %c160 = arith.constant 160 : index
    %c0_58 = arith.constant 0 : index
    %111 = vector.load %arg12[%c0_57, %c160, %c0_58] : memref<1x360x128xf32, #tpu.memory_space<vmem>>, vector<1x32x32xf32>
    %112 = vector.shape_cast %111 : vector<1x32x32xf32> to vector<32x32xf32>
    %cst_59 = arith.constant dense<0.000000e+00> : vector<16x32xf32>
    %113 = tpu.matmul %110, %112, %cst_59 {dimension_numbers = #tpu.dot_dimension_numbers<[1], [0], [0], [1], [0, 0, 1, 1], [], []>} : vector<16x32xf32>, vector<32x32xf32>, vector<16x32xf32> -> vector<16x32xf32>
    %114 = arith.addf %67, %113 : vector<16x32xf32>
    %c0_60 = arith.constant 0 : index
    %c192 = arith.constant 192 : index
    %c0_61 = arith.constant 0 : index
    %115 = vector.load %arg12[%c0_60, %c192, %c0_61] : memref<1x360x128xf32, #tpu.memory_space<vmem>>, vector<1x1x32xf32>
    %116 = vector.shape_cast %115 : vector<1x1x32xf32> to vector<1x32xf32>
    %117 = vector.broadcast %116 : vector<1x32xf32> to vector<16x32xf32>
    %118 = arith.addf %114, %117 : vector<16x32xf32>
    %c0_62 = arith.constant 0 : index
    %c216 = arith.constant 216 : index
    %c0_63 = arith.constant 0 : index
    %119 = vector.load %arg12[%c0_62, %c216, %c0_63] : memref<1x360x128xf32, #tpu.memory_space<vmem>>, vector<1x1x32xf32>
    %120 = vector.shape_cast %119 : vector<1x1x32xf32> to vector<1x32xf32>
    %c0_64 = arith.constant 0 : index
    %c224 = arith.constant 224 : index
    %c0_65 = arith.constant 0 : index
    %121 = vector.load %arg12[%c0_64, %c224, %c0_65] : memref<1x360x128xf32, #tpu.memory_space<vmem>>, vector<1x1x32xf32>
    %122 = vector.shape_cast %121 : vector<1x1x32xf32> to vector<1x32xf32>
    %cst_66 = arith.constant dense<0.000000e+00> : vector<16xf32>
    %123 = vector.multi_reduction <add>, %118, %cst_66 [1] : vector<16x32xf32> to vector<16xf32>
    %124 = vector.shape_cast %123 : vector<16xf32> to vector<16x1xf32>
    %cst_67 = arith.constant 3.200000e+01 : f32
    %125 = vector.broadcast %cst_67 : f32 to vector<16x1xf32>
    %126 = arith.divf %124, %125 : vector<16x1xf32>
    %127 = vector.broadcast %126 : vector<16x1xf32> to vector<16x32xf32>
    %128 = arith.subf %118, %127 : vector<16x32xf32>
    %129 = arith.mulf %128, %128 : vector<16x32xf32>
    %cst_68 = arith.constant dense<0.000000e+00> : vector<16xf32>
    %130 = vector.multi_reduction <add>, %129, %cst_68 [1] : vector<16x32xf32> to vector<16xf32>
    %131 = vector.shape_cast %130 : vector<16xf32> to vector<16x1xf32>
    %cst_69 = arith.constant 3.200000e+01 : f32
    %132 = vector.broadcast %cst_69 : f32 to vector<16x1xf32>
    %133 = arith.divf %131, %132 : vector<16x1xf32>
    %134 = vector.broadcast %126 : vector<16x1xf32> to vector<16x32xf32>
    %135 = arith.subf %118, %134 : vector<16x32xf32>
    %cst_70 = arith.constant 9.99999974E-6 : f32
    %136 = vector.broadcast %cst_70 : f32 to vector<16x1xf32>
    %137 = arith.addf %133, %136 : vector<16x1xf32>
    %138 = math.rsqrt %137 : vector<16x1xf32>
    %139 = vector.broadcast %138 : vector<16x1xf32> to vector<16x32xf32>
    %140 = arith.mulf %135, %139 : vector<16x32xf32>
    %141 = vector.broadcast %120 : vector<1x32xf32> to vector<16x32xf32>
    %142 = arith.mulf %140, %141 : vector<16x32xf32>
    %143 = vector.broadcast %122 : vector<1x32xf32> to vector<16x32xf32>
    %144 = arith.addf %142, %143 : vector<16x32xf32>
    %c0_71 = arith.constant 0 : index
    %c248 = arith.constant 248 : index
    %c0_72 = arith.constant 0 : index
    %145 = vector.load %arg12[%c0_71, %c248, %c0_72] : memref<1x360x128xf32, #tpu.memory_space<vmem>>, vector<1x32x64xf32>
    %146 = vector.shape_cast %145 : vector<1x32x64xf32> to vector<32x64xf32>
    %cst_73 = arith.constant dense<0.000000e+00> : vector<16x64xf32>
    %147 = tpu.matmul %144, %146, %cst_73 {dimension_numbers = #tpu.dot_dimension_numbers<[1], [0], [0], [1], [0, 0, 1, 1], [], []>} : vector<16x32xf32>, vector<32x64xf32>, vector<16x64xf32> -> vector<16x64xf32>
    %c0_74 = arith.constant 0 : index
    %c280 = arith.constant 280 : index
    %c0_75 = arith.constant 0 : index
    %148 = vector.load %arg12[%c0_74, %c280, %c0_75] : memref<1x360x128xf32, #tpu.memory_space<vmem>>, vector<1x1x64xf32>
    %149 = vector.shape_cast %148 : vector<1x1x64xf32> to vector<1x64xf32>
    %150 = vector.broadcast %149 : vector<1x64xf32> to vector<16x64xf32>
    %151 = arith.addf %147, %150 : vector<16x64xf32>
    %cst_76 = arith.constant 0.000000e+00 : f32
    %152 = vector.broadcast %cst_76 : f32 to vector<16x64xf32>
    %153 = arith.maximumf %151, %152 : vector<16x64xf32>
    %c0_77 = arith.constant 0 : index
    %c288 = arith.constant 288 : index
    %c0_78 = arith.constant 0 : index
    %154 = vector.load %arg12[%c0_77, %c288, %c0_78] : memref<1x360x128xf32, #tpu.memory_space<vmem>>, vector<1x64x32xf32>
    %155 = vector.shape_cast %154 : vector<1x64x32xf32> to vector<64x32xf32>
    %cst_79 = arith.constant dense<0.000000e+00> : vector<16x32xf32>
    %156 = tpu.matmul %153, %155, %cst_79 {dimension_numbers = #tpu.dot_dimension_numbers<[1], [0], [0], [1], [0, 0, 1, 1], [], []>} : vector<16x64xf32>, vector<64x32xf32>, vector<16x32xf32> -> vector<16x32xf32>
    %157 = arith.addf %144, %156 : vector<16x32xf32>
    %c0_80 = arith.constant 0 : index
    %c352 = arith.constant 352 : index
    %c0_81 = arith.constant 0 : index
    %158 = vector.load %arg12[%c0_80, %c352, %c0_81] : memref<1x360x128xf32, #tpu.memory_space<vmem>>, vector<1x1x32xf32>
    %159 = vector.shape_cast %158 : vector<1x1x32xf32> to vector<1x32xf32>
    %160 = vector.broadcast %159 : vector<1x32xf32> to vector<16x32xf32>
    %161 = arith.addf %157, %160 : vector<16x32xf32>
    %c0_82 = arith.constant 0 : index
    %c232 = arith.constant 232 : index
    %c0_83 = arith.constant 0 : index
    %162 = vector.load %arg12[%c0_82, %c232, %c0_83] : memref<1x360x128xf32, #tpu.memory_space<vmem>>, vector<1x1x32xf32>
    %163 = vector.shape_cast %162 : vector<1x1x32xf32> to vector<1x32xf32>
    %c0_84 = arith.constant 0 : index
    %c240 = arith.constant 240 : index
    %c0_85 = arith.constant 0 : index
    %164 = vector.load %arg12[%c0_84, %c240, %c0_85] : memref<1x360x128xf32, #tpu.memory_space<vmem>>, vector<1x1x32xf32>
    %165 = vector.shape_cast %164 : vector<1x1x32xf32> to vector<1x32xf32>
    %cst_86 = arith.constant dense<0.000000e+00> : vector<16xf32>
    %166 = vector.multi_reduction <add>, %161, %cst_86 [1] : vector<16x32xf32> to vector<16xf32>
    %167 = vector.shape_cast %166 : vector<16xf32> to vector<16x1xf32>
    %cst_87 = arith.constant 3.200000e+01 : f32
    %168 = vector.broadcast %cst_87 : f32 to vector<16x1xf32>
    %169 = arith.divf %167, %168 : vector<16x1xf32>
    %170 = vector.broadcast %169 : vector<16x1xf32> to vector<16x32xf32>
    %171 = arith.subf %161, %170 : vector<16x32xf32>
    %172 = arith.mulf %171, %171 : vector<16x32xf32>
    %cst_88 = arith.constant dense<0.000000e+00> : vector<16xf32>
    %173 = vector.multi_reduction <add>, %172, %cst_88 [1] : vector<16x32xf32> to vector<16xf32>
    %174 = vector.shape_cast %173 : vector<16xf32> to vector<16x1xf32>
    %cst_89 = arith.constant 3.200000e+01 : f32
    %175 = vector.broadcast %cst_89 : f32 to vector<16x1xf32>
    %176 = arith.divf %174, %175 : vector<16x1xf32>
    %177 = vector.broadcast %169 : vector<16x1xf32> to vector<16x32xf32>
    %178 = arith.subf %161, %177 : vector<16x32xf32>
    %cst_90 = arith.constant 9.99999974E-6 : f32
    %179 = vector.broadcast %cst_90 : f32 to vector<16x1xf32>
    %180 = arith.addf %176, %179 : vector<16x1xf32>
    %181 = math.rsqrt %180 : vector<16x1xf32>
    %182 = vector.broadcast %181 : vector<16x1xf32> to vector<16x32xf32>
    %183 = arith.mulf %178, %182 : vector<16x32xf32>
    %184 = vector.broadcast %163 : vector<1x32xf32> to vector<16x32xf32>
    %185 = arith.mulf %183, %184 : vector<16x32xf32>
    %186 = vector.broadcast %165 : vector<1x32xf32> to vector<16x32xf32>
    %187 = arith.addf %185, %186 : vector<16x32xf32>
    %c0_91 = arith.constant 0 : index
    %c0_92 = arith.constant 0 : index
    %188 = vector.load %arg15[%c0_91, %c0_92] : memref<16x32xf32, #tpu.memory_space<vmem>>, vector<16x32xf32>
    tpu.vector_store %arg15[%c0_91, %c0_92], %187 {strides = array<i32>} : memref<16x32xf32, #tpu.memory_space<vmem>>, vector<16x32xf32>,
    %c2_i32 = arith.constant 2 : i32
    %189 = arith.cmpi eq, %arg1, %c2_i32 : i32
    %190 = arith.extui %189 : i1 to i32
    %c0_i32_93 = arith.constant 0 : i32
    %191 = arith.cmpi ne, %190, %c0_i32_93 : i32
    scf.if %191 {
      %c0_95 = arith.constant 0 : index
      %c0_96 = arith.constant 0 : index
      %195 = vector.load %arg16[%c0_95, %c0_96] : memref<16x32xf32, #tpu.memory_space<vmem>>, vector<16x32xf32>
      tpu.vector_store %arg16[%c0_95, %c0_96], %187 {strides = array<i32>} : memref<16x32xf32, #tpu.memory_space<vmem>>, vector<16x32xf32>,
    } else {
    }
    %c3_i32 = arith.constant 3 : i32
    %192 = arith.cmpi eq, %arg1, %c3_i32 : i32
    %193 = arith.extui %192 : i1 to i32
    %c0_i32_94 = arith.constant 0 : i32
    %194 = arith.cmpi ne, %193, %c0_i32_94 : i32
    scf.if %194 {
      %c0_95 = arith.constant 0 : index
      %c0_96 = arith.constant 0 : index
      %195 = vector.load %arg16[%c0_95, %c0_96] : memref<16x32xf32, #tpu.memory_space<vmem>>, vector<16x32xf32>
      %196 = tpu.concatenate %187, %195 in 1 : vector<16x32xf32>, vector<16x32xf32> -> vector<16x64xf32>
      %c0_97 = arith.constant 0 : index
      %c0_98 = arith.constant 0 : index
      %197 = vector.load %arg13[%c0_97, %c0_98] : memref<296x128xf32, #tpu.memory_space<vmem>>, vector<64x32xf32>
      %cst_99 = arith.constant dense<0.000000e+00> : vector<16x32xf32>
      %198 = tpu.matmul %196, %197, %cst_99 {dimension_numbers = #tpu.dot_dimension_numbers<[1], [0], [0], [1], [0, 0, 1, 1], [], []>} : vector<16x64xf32>, vector<64x32xf32>, vector<16x32xf32> -> vector<16x32xf32>
      %c64 = arith.constant 64 : index
      %c0_100 = arith.constant 0 : index
      %199 = vector.load %arg13[%c64, %c0_100] : memref<296x128xf32, #tpu.memory_space<vmem>>, vector<1x32xf32>
      %200 = vector.broadcast %199 : vector<1x32xf32> to vector<16x32xf32>
      %201 = arith.addf %198, %200 : vector<16x32xf32>
      %cst_101 = arith.constant 0.000000e+00 : f32
      %202 = vector.broadcast %cst_101 : f32 to vector<16x32xf32>
      %203 = arith.maximumf %201, %202 : vector<16x32xf32>
      %c72_102 = arith.constant 72 : index
      %c0_103 = arith.constant 0 : index
      %204 = vector.load %arg13[%c72_102, %c0_103] : memref<296x128xf32, #tpu.memory_space<vmem>>, vector<32x64xf32>
      %cst_104 = arith.constant dense<0.000000e+00> : vector<16x64xf32>
      %205 = tpu.matmul %203, %204, %cst_104 {dimension_numbers = #tpu.dot_dimension_numbers<[1], [0], [0], [1], [0, 0, 1, 1], [], []>} : vector<16x32xf32>, vector<32x64xf32>, vector<16x64xf32> -> vector<16x64xf32>
      %206 = arith.addf %196, %205 : vector<16x64xf32>
      %c104 = arith.constant 104 : index
      %c0_105 = arith.constant 0 : index
      %207 = vector.load %arg13[%c104, %c0_105] : memref<296x128xf32, #tpu.memory_space<vmem>>, vector<1x64xf32>
      %208 = vector.broadcast %207 : vector<1x64xf32> to vector<16x64xf32>
      %209 = arith.addf %206, %208 : vector<16x64xf32>
      %c112_106 = arith.constant 112 : index
      %c0_107 = arith.constant 0 : index
      %210 = vector.load %arg13[%c112_106, %c0_107] : memref<296x128xf32, #tpu.memory_space<vmem>>, vector<64x32xf32>
      %cst_108 = arith.constant dense<0.000000e+00> : vector<16x32xf32>
      %211 = tpu.matmul %209, %210, %cst_108 {dimension_numbers = #tpu.dot_dimension_numbers<[1], [0], [0], [1], [0, 0, 1, 1], [], []>} : vector<16x64xf32>, vector<64x32xf32>, vector<16x32xf32> -> vector<16x32xf32>
      %c176 = arith.constant 176 : index
      %c0_109 = arith.constant 0 : index
      %212 = vector.load %arg13[%c176, %c0_109] : memref<296x128xf32, #tpu.memory_space<vmem>>, vector<1x32xf32>
      %213 = vector.broadcast %212 : vector<1x32xf32> to vector<16x32xf32>
      %214 = arith.addf %211, %213 : vector<16x32xf32>
      %cst_110 = arith.constant 0.000000e+00 : f32
      %215 = vector.broadcast %cst_110 : f32 to vector<16x32xf32>
      %216 = arith.maximumf %214, %215 : vector<16x32xf32>
      %c184 = arith.constant 184 : index
      %c0_111 = arith.constant 0 : index
      %217 = vector.load %arg13[%c184, %c0_111] : memref<296x128xf32, #tpu.memory_space<vmem>>, vector<32x64xf32>
      %cst_112 = arith.constant dense<0.000000e+00> : vector<16x64xf32>
      %218 = tpu.matmul %216, %217, %cst_112 {dimension_numbers = #tpu.dot_dimension_numbers<[1], [0], [0], [1], [0, 0, 1, 1], [], []>} : vector<16x32xf32>, vector<32x64xf32>, vector<16x64xf32> -> vector<16x64xf32>
      %219 = arith.addf %209, %218 : vector<16x64xf32>
      %c216_113 = arith.constant 216 : index
      %c0_114 = arith.constant 0 : index
      %220 = vector.load %arg13[%c216_113, %c0_114] : memref<296x128xf32, #tpu.memory_space<vmem>>, vector<1x64xf32>
      %221 = vector.broadcast %220 : vector<1x64xf32> to vector<16x64xf32>
      %222 = arith.addf %219, %221 : vector<16x64xf32>
      %c224_115 = arith.constant 224 : index
      %c0_116 = arith.constant 0 : index
      %223 = vector.load %arg13[%c224_115, %c0_116] : memref<296x128xf32, #tpu.memory_space<vmem>>, vector<64x128xf32>
      %cst_117 = arith.constant dense<0.000000e+00> : vector<16x128xf32>
      %224 = tpu.matmul %222, %223, %cst_117 {dimension_numbers = #tpu.dot_dimension_numbers<[1], [0], [0], [1], [0, 0, 1, 1], [], []>} : vector<16x64xf32>, vector<64x128xf32>, vector<16x128xf32> -> vector<16x128xf32>
      %c288_118 = arith.constant 288 : index
      %c0_119 = arith.constant 0 : index
      %225 = vector.load %arg13[%c288_118, %c0_119] : memref<296x128xf32, #tpu.memory_space<vmem>>, vector<1x128xf32>
      %226 = vector.broadcast %225 : vector<1x128xf32> to vector<16x128xf32>
      %227 = arith.addf %224, %226 : vector<16x128xf32>
      %228 = vector.extract_strided_slice %227 {offsets = [0, 0], sizes = [16, 8], strides = [1, 1]} : vector<16x128xf32> to vector<16x8xf32>
      %229 = vector.extract_strided_slice %227 {offsets = [0, 8], sizes = [16, 1], strides = [1, 1]} : vector<16x128xf32> to vector<16x1xf32>
      %230 = arith.negf %229 : vector<16x1xf32>
      %231 = math.exp %230 : vector<16x1xf32>
      %cst_120 = arith.constant 1.000000e+00 : f32
      %232 = vector.broadcast %cst_120 : f32 to vector<16x1xf32>
      %233 = arith.addf %232, %231 : vector<16x1xf32>
      %234 = arith.divf %232, %233 : vector<16x1xf32>
      %235 = vector.broadcast %234 : vector<16x1xf32> to vector<16x8xf32>
      %236 = arith.mulf %235, %228 : vector<16x8xf32>
      %cst_121 = arith.constant 1.000000e+00 : f32
      %237 = vector.broadcast %cst_121 : f32 to vector<16x1xf32>
      %238 = arith.subf %237, %234 : vector<16x1xf32>
      %c0_122 = arith.constant 0 : index
      %c0_123 = arith.constant 0 : index
      %c0_124 = arith.constant 0 : index
      %239 = vector.load %arg2[%c0_122, %c0_123, %c0_124] : memref<1x16x8xf32, #tpu.memory_space<vmem>>, vector<1x16x8xf32>
      %240 = vector.shape_cast %239 : vector<1x16x8xf32> to vector<16x8xf32>
      %241 = vector.broadcast %238 : vector<16x1xf32> to vector<16x8xf32>
      %242 = arith.mulf %241, %240 : vector<16x8xf32>
      %243 = arith.addf %236, %242 : vector<16x8xf32>
      %cst_125 = arith.constant 0.000000e+00 : f32
      %244 = vector.broadcast %cst_125 : f32 to vector<16x119xf32>
      %245 = tpu.concatenate %243, %234, %244 in 1 : vector<16x8xf32>, vector<16x1xf32>, vector<16x119xf32> -> vector<16x128xf32>
      %c0_126 = arith.constant 0 : index
      %c0_127 = arith.constant 0 : index
      %c0_128 = arith.constant 0 : index
      %246 = vector.load %arg14[%c0_126, %c0_127, %c0_128] : memref<1x16x128xf32, #tpu.memory_space<vmem>>, vector<1x16x128xf32>
      %247 = vector.shape_cast %246 : vector<1x16x128xf32> to vector<16x128xf32>
      %248 = vector.shape_cast %245 : vector<16x128xf32> to vector<1x16x128xf32>
      tpu.vector_store %arg14[%c0_126, %c0_127, %c0_128], %248 {strides = array<i32>} : memref<1x16x128xf32, #tpu.memory_space<vmem>>, vector<1x16x128xf32>,
    } else {
    }
    return
  }
  func.func @transform_0(%arg0: i32, %arg1: i32) -> (i32, i32, i32) {
    %c0_i32 = arith.constant 0 : i32
    %c0_i32_0 = arith.constant 0 : i32
    %c0_i32_1 = arith.constant 0 : i32
    return %arg0, %c0_i32, %c0_i32_0 : i32, i32, i32
  }
  func.func @transform_1(%arg0: i32, %arg1: i32) -> (i32, i32) {
    %c0_i32 = arith.constant 0 : i32
    %c0_i32_0 = arith.constant 0 : i32
    %c0_i32_1 = arith.constant 0 : i32
    return %c0_i32, %c0_i32_0 : i32, i32
  }
  func.func @transform_2(%arg0: i32, %arg1: i32) -> (i32, i32) {
    %c0_i32 = arith.constant 0 : i32
    %c0_i32_0 = arith.constant 0 : i32
    %c0_i32_1 = arith.constant 0 : i32
    return %c0_i32, %c0_i32_0 : i32, i32
  }
  func.func @transform_3(%arg0: i32, %arg1: i32) -> (i32, i32) {
    %c0_i32 = arith.constant 0 : i32
    %c0_i32_0 = arith.constant 0 : i32
    %c0_i32_1 = arith.constant 0 : i32
    return %c0_i32, %c0_i32_0 : i32, i32
  }
  func.func @transform_4(%arg0: i32, %arg1: i32) -> (i32, i32, i32) {
    %c0_i32 = arith.constant 0 : i32
    %c0_i32_0 = arith.constant 0 : i32
    %c0_i32_1 = arith.constant 0 : i32
    return %arg0, %c0_i32, %c0_i32_0 : i32, i32, i32
  }
  func.func @transform_5(%arg0: i32, %arg1: i32) -> (i32, i32, i32) {
    %c0_i32 = arith.constant 0 : i32
    %c0_i32_0 = arith.constant 0 : i32
    %c0_i32_1 = arith.constant 0 : i32
    return %arg0, %c0_i32, %c0_i32_0 : i32, i32, i32
  }
  func.func @transform_6(%arg0: i32, %arg1: i32) -> (i32, i32) {
    %c0_i32 = arith.constant 0 : i32
    %c0_i32_0 = arith.constant 0 : i32
    %c0_i32_1 = arith.constant 0 : i32
    return %c0_i32, %c0_i32_0 : i32, i32
  }
  func.func @transform_7(%arg0: i32, %arg1: i32) -> (i32, i32) {
    %c0_i32 = arith.constant 0 : i32
    %c0_i32_0 = arith.constant 0 : i32
    %c0_i32_1 = arith.constant 0 : i32
    return %c0_i32, %c0_i32_0 : i32, i32
  }
  func.func @transform_8(%arg0: i32, %arg1: i32) -> (i32, i32) {
    %c0_i32 = arith.constant 0 : i32
    %c0_i32_0 = arith.constant 0 : i32
    %c0_i32_1 = arith.constant 0 : i32
    return %c0_i32, %c0_i32_0 : i32, i32
  }
  func.func @transform_9(%arg0: i32, %arg1: i32) -> (i32, i32) {
    %c0_i32 = arith.constant 0 : i32
    %c0_i32_0 = arith.constant 0 : i32
    %c0_i32_1 = arith.constant 0 : i32
    return %c0_i32, %c0_i32_0 : i32, i32
  }
  func.func @transform_10(%arg0: i32, %arg1: i32) -> (i32, i32, i32) {
    %c0_i32 = arith.constant 0 : i32
    %c0_i32_0 = arith.constant 0 : i32
    %c0_i32_1 = arith.constant 0 : i32
    return %arg1, %c0_i32, %c0_i32_0 : i32, i32, i32
  }
  func.func @transform_11(%arg0: i32, %arg1: i32) -> (i32, i32) {
    %c0_i32 = arith.constant 0 : i32
    %c0_i32_0 = arith.constant 0 : i32
    %c0_i32_1 = arith.constant 0 : i32
    return %c0_i32, %c0_i32_0 : i32, i32
  }
  func.func @transform_12(%arg0: i32, %arg1: i32) -> (i32, i32, i32) {
    %c0_i32 = arith.constant 0 : i32
    %c0_i32_0 = arith.constant 0 : i32
    %c0_i32_1 = arith.constant 0 : i32
    return %arg0, %c0_i32, %c0_i32_0 : i32, i32, i32
  }
}

</mosaic_0001>

<bundles_post_ra>
// kernel: squeeze.33
= control target key start
LH: loop header
LB: loop body
LE: loop exit
PB: predicated region body
PF: predicated region fallthrough
CT: control target
= control target key end

     0   :  { %s99_s0 = inlined_call_operand.vmem [shape: f32[2,16], index: 0, kind: input, shape index: {}]   ;;  %s100_s1 = inlined_call_operand.hbm [shape: f32[2,1,4,4], index: 1, kind: output, shape index: {}]  }
   0x1   :  { %v6_v0 = vld [vmem:[%s99_s0] sm:$0x3] }
   0x2   :  { %7 = vst [vmem:[#allocation3] sm:$0x3] %v6_v0 }
   0x3   :  { %2 = vsyncpa [#allocation1], 0  ;;  %s79_s0 = smov 124   ;;  %s80_s8 = smov 116   ;;  %vm9_vm0 = vcmask 31744  }
   0x4   :  { %s81_s9 = smov 120   ;;  %s82_s10 = smov [#allocation0]  }
   0x5   :  { %s47_s11 = sshll.u32 %s82_s10, 4  ;;  %s48_s11 = int_to_ptr.vmem [resolvable:$true] %s47_s11 }
   0x6   :  { %s57_s12 = scalar_lea.vmem %s48_s11, 128  ;;  %p62_p1 = scmp.lt.s32.totalorder %s48_s11, %s48_s11 }
   0x7   :  { %p58_p0 = scmp.ne.s32.totalorder %s48_s11, %s57_s12  ;;  %p63_p2 = scmp.lt.s32.totalorder %s57_s12, %s57_s12 }
   0x9   :  { %v11_v1 = vld [vmem:[#allocation3] sm:$0x3]   ;;  %p64_p3 = por %p63_p2, %p62_p1 }
   0xa   :  { %v23_v2 = vld [vmem:[#allocation3] sm:$0x3]   ;;  %12 = vrot.lane.b32.xlu0 %v11_v1, %s79_s0 }
   0xb   :  { %24 = vrot.lane.b32.xlu1 %v23_v2, %s80_s8  ;;  %v8_v3 = vld [vmem:[#allocation3] sm:$0x3]   ;;  %p65_p4 = pnand %p64_p3, %p58_p0 }
   0xc   :  { %v17_v4 = vld [vmem:[#allocation3] sm:$0x3]   ;;  %10 = vst.msk [vmem:[#allocation2] ss:$8 sm:$0x3] %vm9_vm0, %v8_v3  }
   0xe   :  { %18 = vrot.lane.b32.xlu0 %v17_v4, %s81_s9 }
  0x7c   :  { %v13_v5 = vpop.permute.xlu0 %12  }
  0x7d   :  { %v25_v6 = vpop.permute.xlu1 %24   ;;  %16 = vst.msk [vmem:[#allocation2 + $0x1] ss:$8 sm:$0x3] %vm9_vm0, %v13_v5  }
  0x7e   :  { %28 = vst.msk [vmem:[#allocation2 + $0x3] ss:$8 sm:$0x3] %vm9_vm0, %v25_v6  }
  0x80   :  { %v19_v7 = vpop.permute.xlu0 %18  }
  0x81   :  { %22 = vst.msk [vmem:[#allocation2 + $0x2] ss:$8 sm:$0x3] %vm9_vm0, %v19_v7  }
  0x88   :  { %v33_v8 = vld [vmem:[#allocation2] sm:$0xf]  ;;  %v38_v9 = vld [vmem:[#allocation2 + $0x8] sm:$0xf] }
  0x89   :  { %36 = vst [vmem:[#allocation0] sm:$0xf] %v33_v8  ;;  %42 = vst [vmem:[#allocation0 + $0x4] sm:$0xf] %v38_v9 }
  0x8a   :  { %68 = shalt.err (!%p65_p4)
}
  0x8b   :  { %50 = dma.vmem_to_hbm [thread:$0]  %s48_s11, 128, %s100_s1, [#allocation1]  }
  0x8c   :  { %77 = dma.done.wait [#allocation1], 128  }
  0x8d   :  { %78 = vsyncadd [#allocation1], 4294967168 }
  0x8e   :  { %52 = vsyncpa [#allocation1], 1 }

// kernel: text_rebuild_forward.1
= control target key start
LH: loop header
LB: loop body
LE: loop exit
PB: predicated region body
PF: predicated region fallthrough
CT: control target
= control target key end

     0   :  { %s3454_s21 = smov 0   ;;  %s3456_s22 = smov 0   ;;  %s3990_s0 = inlined_call_operand.vmem [shape: f32[2,16,8], index: 0, kind: input, shape index: {}]   ;;  %s3991_s1 = inlined_call_operand.vmem [shape: f32[8,32], index: 1, kind: input, shape index: {}]   ;;  %s3992_s2 = inlined_call_operand.vmem [shape: f32[1,32], index: 2, kind: input, shape index: {}]   ;;  %s3993_s3 = inlined_call_operand.vmem [shape: f32[16,32], index: 3, kind: input, shape index: {}]   ;;  %s3994_s4 = inlined_call_operand.vmem [shape: f32[2,8,32], index: 4, kind: input, shape index: {}]   ;;  %s3995_s5 = inlined_call_operand.vmem [shape: f32[2,1,8], index: 5, kind: input, shape index: {}]   ;;  %s3996_s6 = inlined_call_operand.vmem [shape: f32[64,32], index: 6, kind: input, shape index: {}]   ;;  %s3997_s7 = inlined_call_operand.vmem [shape: f32[64,64], index: 7, kind: input, shape index: {}]   ;;  %s3998_s8 = inlined_call_operand.vmem [shape: f32[32,32], index: 8, kind: input, shape index: {}, may-alias: {8,9}]   ;;  %s3999_s9 = inlined_call_operand.vmem [shape: f32[32,32], index: 9, kind: input, shape index: {}, may-alias: {8,9}]   ;;  %s4000_s10 = inlined_call_operand.vmem [shape: f32[4,360,128], index: 10, kind: input, shape index: {}]   ;;  %s4001_s11 = inlined_call_operand.vmem [shape: f32[296,128], index: 11, kind: input, shape index: {}]   ;;  %s4002_s12 = inlined_call_operand.vmem [shape: f32[2,16,128], index: 12, kind: output, shape index: {}]  }
   0x1   :  { %4008 = sst [smem:[#allocation9_spill]] %s3999_s9  ;;  %s3458_s23 = smov 0  }
   0x2   :  { %4009 = sst [smem:[#allocation10_spill]] %s4001_s11  ;;  %s3460_s24 = smov 0  }
   0x3   :  { %s3462_s25 = smov 0  }
   0x4 LB: > { %4010 = sst [smem:[#allocation4_spill]] %s3369_s23  ;;  %s31_s26 = sadd.s32 1, %s3369_s23  ;;  %s3377_s25 = sphi %s3462_s25, %s22_s25   ;;  %s3373_s24 = sphi %s3460_s24, %s4022_s24   ;;  %s3369_s23 = sphi %s3458_s23, %s4021_s23   ;;  %s3365_s22 = sphi %s3456_s22, %s4020_s22   ;;  %s3361_s21 = sphi %s3454_s21, %s4019_s21  }
   0x5   : > { %4011 = sst [smem:[#allocation5_spill]] %s3373_s24  ;;  %s34_s27 = sadd.s32 1, %s3373_s24 }
   0x6   : > { %4012 = sst [smem:[#allocation6_spill]] %s3377_s25  ;;  %p32_p0 = scmp.ge.s32.totalorder %s31_s26, 4 }
   0x7   : > { %p2769_p1 = scmp.ge.s32.totalorder %s3377_s25, 1  ;;  %p401_p2 = scmp.lt.s32.totalorder %s3377_s25, 9 }
   0x8   : > { %s4024_s26 = smov (%p32_p0, %s31_s26), 0  ;;  %s4026_s27 = smov (!%p32_p0, %s34_s27), %s3373_s24 }
   0x9   : > { %4013 = sst [smem:[#allocation7_spill]] %s4024_s26  ;;  %p402_p3 = pnand %p2769_p1, %p401_p2 }
   0xa   : > { %p36_p4 = scmp.ge.s32.totalorder %s4026_s27, 2  ;;  %p455_p5 = scmp.lt.s32.totalorder (!%p402_p3), %s3365_s22, 1 }
   0xb   : > { %405 = sbr.rel (%p402_p3) target bundleno = 5334 (0x14d6), region = 68  ;;  %p467_p6 = scmp.lt.s32.totalorder (!%p402_p3), %s3361_s21, 3 }
   0xc   : > { %s4028_s27 = smov (%p36_p4, %s4026_s27), 0  ;;  %p2776_p7 = scmp.ne.s32.totalorder (!%p402_p3), %s3361_s21, 0 }
   0xd   : > { %4014 = sst [smem:[#allocation8_spill]] %s4028_s27 }
  0x10   : > { %s4030_s22 = smov (!%p455_p5, %s3365_s22), 1 }
  0x11   : > { %s468_s28 = scalar_select %p467_p6, %s3361_s21, 3 }
  0x12   : > { %s2851_s29 = sshll.u32 %s4030_s22, 4  ;;  %s2772_s30 = sshll.u32 %s4030_s22, 3 }
  0x13   : > { %s3495_s15 = scalar_lea.vmem %s3990_s0, %s2851_s29  ;;  %s3500_s18 = scalar_lea.vmem %s3994_s4, %s2772_s30 }
  0x14   : > { %s466_s27 = scalar_lea.vmem %s3995_s5, %s4030_s22  ;;  %s3250_s26 = smul.u32 360, %s468_s28 }
  0x15   : > { %s3509_s25 = scalar_lea.vmem %s4002_s12, %s2851_s29  ;;  %480 = sbr.rel (%p2776_p7) target bundleno = 229 (0xe5), region = 72 }
  0x16   : > { %s3514_s13 = scalar_lea.vmem %s4000_s10, %s3250_s26 }
  0x1a   : > { %v483_v0 = vld [vmem:[%s3991_s1] sm:$0xff]  ;;  %vm491_vm0 = vcmask 64512   ;;  %v482_v2 = vld [vmem:[%s3495_s15 + $0x8] sm:$0xff]  ;;  %vm577_vm1 = vcmask 261120  }
  0x1b   : > { %v481_v1 = vld [vmem:[%s3495_s15] sm:$0xff]  ;;  %2991 = vmatprep.subr.mxu0 %v483_v0  ;;  %v574_v5 = vld [vmem:[%s3993_s3 + $0x8] sm:$0xff] }
  0x1c   : > { %2993 = vmatprep.mubr.msk.f32.mxu0 %vm491_vm0, %v481_v1  ;;  %2992 = vmatpush3.msra.mxu0 %v483_v0  ;;  %v2777_v3 = vld [vmem:[%s3992_s2] ss:$0 sm:$0xff] }
  0x1d   : > { %2994 = vmatmul.mubr.msk.f32.vlgmr.msra.gmra.mxu0 %vm491_vm0, %v482_v2  ;;  %v573_v8 = vld [vmem:[%s3993_s3] sm:$0xff] }
  0xdd   : > { %v2995_v4 = vpop.f32.mrf.mxu0 }
  0xde   : > { %v570_v6 = vadd.f32 %v2995_v4, %v2777_v3 }
  0xdf   : > { %v564_v7 = vpop.f32.mrf.mxu0 }
  0xe0   : > { %v576_v9 = vadd.f32 %v574_v5, %v570_v6  ;;  %v565_v10 = vadd.f32 %v2777_v3, %v564_v7 }
  0xe2   : > { %579 = vst.msk [vmem:[#allocation2 + $0x8] sm:$0xff] %vm577_vm1, %v576_v9  ;;  %v575_v11 = vadd.f32 %v573_v8, %v565_v10 }
  0xe4   : > { %578 = vst.msk [vmem:[#allocation2] sm:$0xff] %vm577_vm1, %v575_v11 }
  0xe5 PF: > { %v585_v12 = vld [vmem:[%s3514_s13 + $0x18] sm:$0xff]  ;;  %v584_v13 = vld [vmem:[%s3514_s13 + $0x10] sm:$0xff]  ;;  %vm591_vm2 = vcmask 261120   ;;  %v583_v15 = vld [vmem:[%s3514_s13 + $0x8] sm:$0xff]  ;;  %s3379_s20 = smov 32   ;;  %s3380_s30 = smov 96  }
  0xe6   : > { %2996 = vmatprep.subr.mxu1 %v585_v12  ;;  %v3541_v16 = vld [vmem:[%s3996_s6 + $0x38] sm:$0xff]  ;;  %v3546_v17 = vld [vmem:[%s3996_s6 + $0x28] sm:$0xff]  ;;  %v582_v18 = vld [vmem:[%s3514_s13] sm:$0xff]  ;;  %vm884_vm3 = vcmask 523264   ;;  %s3381_s24 = smov 64   ;;  %vm3383_vm4 = vmmov 0  }
  0xe7   : > { %2997 = vmatpush3.msra.mxu1 %v585_v12  ;;  %711 = vrot.lane.b32.xlu0 %v3541_v16, %s3379_s20  ;;  %v3556_v19 = vld [vmem:[%s3996_s6 + $0x30] sm:$0xff]  ;;  %v3561_v20 = vld [vmem:[%s3996_s6 + $0x20] sm:$0xff]  ;;  %v3572_v22 = vld [vmem:[%s3996_s6 + $0x18] sm:$0xff]  ;;  %s3384_s26 = smov 8   ;;  %s3385_s28 = smov 16   ;;  %vm1547_vm5 = vcmask 64512  }
  0xe8   : > { %2998 = vmatprep.subr.mxu1 %v584_v13  ;;  %707 = vrot.lane.b32.xlu1 %v3546_v17, %s3379_s20  ;;  %v3579_v23 = vld [vmem:[%s3996_s6 + $0x10] sm:$0xff]  ;;  %v3588_v24 = vld [vmem:[%s3996_s6 + $0x8] sm:$0xff]  ;;  %v3593_v25 = vld [vmem:[%s3996_s6] sm:$0xff]  ;;  %vm1549_vm6 = vcmask 130048   ;;  %vm1551_vm7 = vcmask 195584   ;;  %p2830_p8 = scmp.ne.s32.totalorder %s3361_s21, 2 }
  0xe9   : > { %2999 = vmatpush3.msra.mxu1 %v584_v13  ;;  %v3563_v21 = vld [vmem:[#allocation2 + $0x8] sm:$0xff]  ;;  %v2780_v28 = vld [vmem:[%s3514_s13 + $0x20] ss:$0 sm:$0xff]  ;;  %v688_v61 = vld [vmem:[%s3997_s7 + $0x38] sm:$0xff] }
  0xea   : > { %3000 = vmatprep.subr.mxu1 %v583_v15  ;;  %3026 = vmatprep.subr.mxu0 %v688_v61  ;;  %v687_v62 = vld [vmem:[%s3997_s7 + $0x30] sm:$0xff]  ;;  %v686_v63 = vld [vmem:[%s3997_s7 + $0x28] sm:$0xff]  ;;  %v685_v0 = vld [vmem:[%s3997_s7 + $0x20] sm:$0xff] }
  0xeb   : > { %v3533_v14 = vld [vmem:[#allocation2] sm:$0xff]  ;;  %3001 = vmatpush3.msra.mxu1 %v583_v15  ;;  %709 = vrot.lane.b32.xlu0 %v3556_v19, %s3379_s20  ;;  %v684_v1 = vld [vmem:[%s3997_s7 + $0x18] sm:$0xff]  ;;  %v683_v2 = vld [vmem:[%s3997_s7 + $0x10] sm:$0xff] }
  0xec   : > { %3004 = vmatprep.mubr.msk.f32.mxu1 %vm591_vm2, %v3533_v14  ;;  %3002 = vmatprep.subr.mxu1 %v582_v18  ;;  %v682_v3 = vld [vmem:[%s3997_s7 + $0x8] sm:$0xff]  ;;  %v681_v4 = vld [vmem:[%s3997_s7] sm:$0xff] }
  0xed   : > { %3003 = vmatpush3.msra.mxu1 %v582_v18  ;;  %705 = vrot.lane.b32.xlu1 %v3561_v20, %s3379_s20 }
  0xee   : > { %3005 = vmatmul.mubr.msk.f32.vlgmr.msra.gmra.mxu1 %vm591_vm2, %v3563_v21  ;;  %3027 = vmatpush3.msra.mxu0 %v688_v61 }
  0xef   : > { %703 = vrot.lane.b32.xlu0 %v3572_v22, %s3379_s20  ;;  %3028 = vmatprep.subr.mxu0 %v687_v62 }
  0xf0   : > { %3029 = vmatpush3.msra.mxu0 %v687_v62  ;;  %v1326_v62 = vld [vmem:[%s3514_s13 + $0x90] sm:$0xff] }
  0xf1   : > { %701 = vrot.lane.b32.xlu1 %v3579_v23, %s3379_s20  ;;  %3030 = vmatprep.subr.mxu0 %v686_v63 }
  0xf2   : > { %3031 = vmatpush3.msra.mxu0 %v686_v63  ;;  %v3382_v63 = vmov 0.0  }
  0xf3   : > { %699 = vrot.lane.b32.xlu0 %v3588_v24, %s3379_s20  ;;  %3032 = vmatprep.subr.mxu0 %v685_v0 }
  0xf4   : > { %3033 = vmatpush3.msra.mxu0 %v685_v0  ;;  %v1325_v0 = vld [vmem:[%s3514_s13 + $0x88] sm:$0xff] }
  0xf5   : > { %697 = vrot.lane.b32.xlu1 %v3593_v25, %s3379_s20  ;;  %3034 = vmatprep.subr.mxu0 %v684_v1 }
  0xf6   : > { %3035 = vmatpush3.msra.mxu0 %v684_v1 }
  0xf7   : > { %3036 = vmatprep.subr.mxu0 %v683_v2 }
  0xf8   : > { %3037 = vmatpush3.msra.mxu0 %v683_v2 }
  0xf9   : > { %3038 = vmatprep.subr.mxu0 %v682_v3 }
  0xfa   : > { %3039 = vmatpush3.msra.mxu0 %v682_v3 }
  0xfb   : > { %3040 = vmatprep.subr.mxu0 %v681_v4 }
  0xfc   : > { %3041 = vmatpush3.msra.mxu0 %v681_v4 }
 0x159   : > { %v712_v26 = vpop.permute.xlu0 %711 }
 0x15a   : > { %v708_v27 = vpop.permute.xlu1 %707 }
 0x15d   : > { %v710_v29 = vpop.permute.xlu0 %709 }
 0x15f   : > { %v706_v32 = vpop.permute.xlu1 %705 }
 0x161   : > { %v704_v37 = vpop.permute.xlu0 %703 }
 0x163   : > { %v702_v39 = vpop.permute.xlu1 %701 }
 0x165   : > { %v700_v42 = vpop.permute.xlu0 %699 }
 0x167   : > { %v698_v44 = vpop.permute.xlu1 %697 }
 0x1ae   : > { %v3006_v30 = vpop.f32.mrf.mxu1 }
 0x1af   : > { %v3600_v31 = vadd.f32 %v3006_v30, %v2780_v28 }
 0x1b0   : > { %v664_v33 = vpop.f32.mrf.mxu1 }
 0x1b1   : > { %v3602_v34 = vadd.f32 %v2780_v28, %v664_v33  ;;  %v728_v35 = vmul.f32 %v712_v26, %v3600_v31  ;;  %v726_v38 = vmul.f32 %v708_v27, %v3600_v31  ;;  %v724_v41 = vmul.f32 %v704_v37, %v3600_v31  ;;  %v1099_v33 = vld [vmem:[%s3514_s13 + $0x38] sm:$0xff] }
 0x1b2   : > { %v722_v45 = vmul.f32 %v700_v42, %v3600_v31 }
 0x1b3   : > { %783 = vrot.lane.b32.xlu0 %v728_v35, %s3380_s30  ;;  %3023 = vmatprep.mubr.msk.f32.mxu1 %vm591_vm2, %v3602_v34  ;;  %v727_v36 = vmul.f32 %v710_v29, %v3602_v34  ;;  %v725_v40 = vmul.f32 %v706_v32, %v3602_v34  ;;  %v723_v43 = vmul.f32 %v702_v39, %v3602_v34  ;;  %v1100_v32 = vld [vmem:[%s3514_s13 + $0x40] sm:$0xff] }
 0x1b4   : > { %v721_v46 = vmul.f32 %v698_v44, %v3602_v34 }
 0x1b5   : > { %781 = vrot.lane.b32.xlu1 %v727_v36, %s3380_s30 }
 0x1b7   : > { %779 = vrot.lane.b32.xlu0 %v726_v38, %s3380_s30 }
 0x1b9   : > { %777 = vrot.lane.b32.xlu1 %v725_v40, %s3380_s30 }
 0x1bb   : > { %775 = vrot.lane.b32.xlu0 %v724_v41, %s3380_s30 }
 0x1bd   : > { %773 = vrot.lane.b32.xlu1 %v723_v43, %s3380_s30 }
 0x1bf   : > { %771 = vrot.lane.b32.xlu0 %v722_v45, %s3380_s30 }
 0x1c1   : > { %769 = vrot.lane.b32.xlu1 %v721_v46, %s3380_s30 }
 0x225   : > { %v784_v47 = vpop.permute.xlu0 %783 }
 0x226   : > { %3007 = vmatprep.subr.msk.mxu1 %vm591_vm2, %v784_v47 }
 0x227   : > { %3008 = vmatpush3.xpose.msk.msra.mxu1 %vm591_vm2, %v784_v47  ;;  %v782_v48 = vpop.permute.xlu1 %781 }
 0x228   : > { %3009 = vmatprep.subr.msk.mxu1 %vm591_vm2, %v782_v48 }
 0x229   : > { %v780_v49 = vpop.permute.xlu0 %779 }
 0x22b   : > { %3010 = vmatpush3.xpose.msk.msra.mxu1 %vm591_vm2, %v782_v48  ;;  %v778_v50 = vpop.permute.xlu1 %777 }
 0x22c   : > { %3011 = vmatprep.subr.msk.mxu1 %vm591_vm2, %v780_v49 }
 0x22d   : > { %v776_v51 = vpop.permute.xlu0 %775 }
 0x22f   : > { %3012 = vmatpush3.xpose.msk.msra.mxu1 %vm591_vm2, %v780_v49  ;;  %v774_v52 = vpop.permute.xlu1 %773  ;;  %v1098_v49 = vld [vmem:[%s3514_s13 + $0x30] sm:$0xff] }
 0x230   : > { %3013 = vmatprep.subr.msk.mxu1 %vm591_vm2, %v778_v50 }
 0x231   : > { %v772_v53 = vpop.permute.xlu0 %771 }
 0x233   : > { %3014 = vmatpush3.xpose.msk.msra.mxu1 %vm591_vm2, %v778_v50  ;;  %v770_v54 = vpop.permute.xlu1 %769  ;;  %v1097_v50 = vld [vmem:[%s3514_s13 + $0x28] sm:$0xff] }
 0x234   : > { %3015 = vmatprep.subr.msk.mxu1 %vm591_vm2, %v776_v51 }
 0x237   : > { %3016 = vmatpush3.xpose.msk.msra.mxu1 %vm591_vm2, %v776_v51 }
 0x238   : > { %3017 = vmatprep.subr.msk.mxu1 %vm591_vm2, %v774_v52 }
 0x23b   : > { %3018 = vmatpush3.xpose.msk.msra.mxu1 %vm591_vm2, %v774_v52 }
 0x23c   : > { %3019 = vmatprep.subr.msk.mxu1 %vm591_vm2, %v772_v53 }
 0x23f   : > { %3020 = vmatpush3.xpose.msk.msra.mxu1 %vm591_vm2, %v772_v53 }
 0x240   : > { %3021 = vmatprep.subr.msk.mxu1 %vm591_vm2, %v770_v54 }
 0x243   : > { %3022 = vmatpush3.xpose.msk.msra.mxu1 %vm591_vm2, %v770_v54  ;;  %v2799_v54 = vld [vmem:[%s3514_s13 + $0x48] ss:$0 sm:$0xff] }
 0x244   : > { %3064 = vmatprep.subr.mxu1 %v1100_v32 }
 0x246   : > { %3024 = vmatmul.mubr.msk.f32.vlgmr.msra.gmra.mxu1 %vm591_vm2, %v3600_v31 }
 0x247   : > { %3065 = vmatpush3.msra.mxu1 %v1100_v32 }
 0x248   : > { %3066 = vmatprep.subr.mxu1 %v1099_v33 }
 0x249   : > { %3067 = vmatpush3.msra.mxu1 %v1099_v33 }
 0x24a   : > { %3068 = vmatprep.subr.mxu1 %v1098_v49 }
 0x24b   : > { %3069 = vmatpush3.msra.mxu1 %v1098_v49 }
 0x24c   : > { %3070 = vmatprep.subr.mxu1 %v1097_v50 }
 0x24d   : > { %3071 = vmatpush3.msra.mxu1 %v1097_v50 }
 0x24e   : > { %3086 = vmatprep.subr.mxu1 %v3382_v63 }
 0x306   : > { %v3025_v55 = vpop.f32.mrf.mxu1 }
 0x307   : > { %v883_v56 = vmul.f32 0.35355338, %v3025_v55 }
 0x308   : > { %v873_v57 = vpop.f32.mrf.mxu1 }
 0x309   : > { %v882_v58 = vmul.f32 0.35355338, %v873_v57  ;;  %v888_v59 = vsel %vm884_vm3, %v883_v56, -inf }
 0x30a   : > { %889 = vmax.xlane.f32.xlu1 %v888_v59 }
 0x30b   : > { %v885_v60 = vsel %vm884_vm3, %v882_v58, -inf }
 0x30c   : > { %886 = vmax.xlane.f32.xlu0 %v885_v60 }
 0x31b   : > { %741 = vrot.lane.b32.xlu1 %v3556_v19, %s3381_s24 }
 0x31f   : > { %737 = vrot.lane.b32.xlu1 %v3561_v20, %s3381_s24 }
 0x322   : > { %743 = vrot.lane.b32.xlu0 %v3541_v16, %s3381_s24 }
 0x323   : > { %733 = vrot.lane.b32.xlu1 %v3579_v23, %s3381_s24 }
 0x326   : > { %739 = vrot.lane.b32.xlu0 %v3546_v17, %s3381_s24 }
 0x327   : > { %729 = vrot.lane.b32.xlu1 %v3593_v25, %s3381_s24 }
 0x32a   : > { %735 = vrot.lane.b32.xlu0 %v3572_v22, %s3381_s24 }
 0x32e   : > { %731 = vrot.lane.b32.xlu0 %v3588_v24, %s3381_s24 }
 0x393   : > { %v890_v5 = vpop.xlane.xlu1 %889 }
 0x394   : > { %v892_v6 = vsub.f32 %v883_v56, %v890_v5 }
 0x395   : > { %v887_v7 = vpop.xlane.xlu0 %886 }
 0x396   : > { %v891_v8 = vsub.f32 %v882_v58, %v887_v7  ;;  %v895_v9 = vmul.f32 1.442695, %v892_v6 }
 0x397   : > { %v742_v10 = vpop.permute.xlu1 %741 }
 0x398   : > { %v893_v11 = vmul.f32 1.442695, %v891_v8  ;;  %v759_v12 = vmul.f32 %v742_v10, %v3602_v34 }
 0x399   : > { %v744_v13 = vpop.permute.xlu0 %743 }
 0x39a   : > { %3301 = vpow2.f32 %v893_v11  ;;  %v760_v15 = vmul.f32 %v744_v13, %v3600_v31  ;;  %1004 = vrot.lane.b32.xlu1 %v759_v12, %s3381_s24  ;;  %v1322_v11 = vld [vmem:[%s3500_s18] sm:$0xff]  ;;  %v1235_v12 = vld [vmem:[%s3514_s13 + $0x68] sm:$0xff]  ;;  %s3386_s18 = smov 24  }
 0x39b   : > { %3303 = vpow2.f32 %v895_v9  ;;  %v738_v16 = vpop.permute.xlu1 %737  ;;  %v1234_v13 = vld [vmem:[%s3514_s13 + $0x60] sm:$0xff] }
 0x39c   : > { %v757_v17 = vmul.f32 %v738_v16, %v3602_v34  ;;  %1006 = vrot.lane.b32.xlu0 %v760_v15, %s3381_s24  ;;  %v1233_v15 = vld [vmem:[%s3514_s13 + $0x58] sm:$0xff]  ;;  %v1232_v16 = vld [vmem:[%s3514_s13 + $0x50] sm:$0xff] }
 0x39d   : > { %v740_v18 = vpop.permute.xlu0 %739 }
 0x39e   : > { %v758_v19 = vmul.f32 %v740_v18, %v3600_v31  ;;  %1000 = vrot.lane.b32.xlu1 %v757_v17, %s3381_s24 }
 0x39f   : > { %v734_v20 = vpop.permute.xlu1 %733 }
 0x3a0   : > { %v755_v22 = vmul.f32 %v734_v20, %v3602_v34  ;;  %1002 = vrot.lane.b32.xlu0 %v758_v19, %s3381_s24 }
 0x3a1   : > { %v736_v23 = vpop.permute.xlu0 %735 }
 0x3a2   : > { %v756_v24 = vmul.f32 %v736_v23, %v3600_v31  ;;  %996 = vrot.lane.b32.xlu1 %v755_v22, %s3381_s24 }
 0x3a3   : > { %v730_v25 = vpop.permute.xlu1 %729 }
 0x3a4   : > { %v753_v26 = vmul.f32 %v730_v25, %v3602_v34  ;;  %998 = vrot.lane.b32.xlu0 %v756_v24, %s3381_s24  ;;  %v2800_v25 = vld [vmem:[%s3514_s13 + $0xc8] ss:$0 sm:$0xff] }
 0x3a5   : > { %v732_v27 = vpop.permute.xlu0 %731 }
 0x3a6   : > { %v754_v28 = vmul.f32 %v732_v27, %v3600_v31  ;;  %992 = vrot.lane.b32.xlu1 %v753_v26, %s3381_s24  ;;  %v2801_v27 = vld [vmem:[%s3514_s13 + $0xd0] ss:$0 sm:$0xff] }
 0x3a7   : > { %v3302_v29 = vpop.eup %3301 }
 0x3a8   : > { %v3304_v30 = vpop.eup %3303  ;;  %3042 = vmatprep.mubr.msk.f32.mxu0 %vm884_vm3, %v3302_v29  ;;  %994 = vrot.lane.b32.xlu0 %v754_v28, %s3381_s24  ;;  %s4015_s24 = sld [smem:[#allocation9_spill]] }
 0x3a9   : > { %3043 = vmatmul.mubr.msk.f32.vlgmr.msra.gmra.mxu0 %vm884_vm3, %v3304_v30 }
 0x3ae   : > { %s4016_s29 = smov %s4015_s24 }
 0x40c   : > { %v1005_v34 = vpop.permute.xlu1 %1004 }
 0x40e   : > { %v1007_v35 = vpop.permute.xlu0 %1006 }
 0x40f   : > { %3045 = vmatprep.subr.mxu0 %v1007_v35 }
 0x410   : > { %v1001_v31 = vpop.permute.xlu1 %1000  ;;  %3046 = vmatpush3.msra.mxu0 %v1007_v35  ;;  %v2805_v35 = vld [vmem:[%s3514_s13 + $0x98] ss:$0 sm:$0xff] }
 0x411   : > { %3047 = vmatprep.subr.mxu0 %v1005_v34 }
 0x412   : > { %3048 = vmatpush3.msra.mxu0 %v1005_v34  ;;  %v1003_v36 = vpop.permute.xlu0 %1002 }
 0x413   : > { %3049 = vmatprep.subr.mxu0 %v1003_v36 }
 0x414   : > { %3050 = vmatpush3.msra.mxu0 %v1003_v36  ;;  %v997_v37 = vpop.permute.xlu1 %996  ;;  %v1409_v36 = vld [vmem:[%s3998_s8 + $0x18] sm:$0xff] }
 0x415   : > { %3051 = vmatprep.subr.mxu0 %v1001_v31 }
 0x416   : > { %3052 = vmatpush3.msra.mxu0 %v1001_v31  ;;  %v999_v38 = vpop.permute.xlu0 %998 }
 0x417   : > { %3053 = vmatprep.subr.mxu0 %v999_v38 }
 0x418   : > { %3054 = vmatpush3.msra.mxu0 %v999_v38  ;;  %v993_v40 = vpop.permute.xlu1 %992 }
 0x419   : > { %3055 = vmatprep.subr.mxu0 %v997_v37 }
 0x41a   : > { %3056 = vmatpush3.msra.mxu0 %v997_v37  ;;  %v995_v39 = vpop.permute.xlu0 %994  ;;  %v1408_v37 = vld [vmem:[%s3998_s8 + $0x10] sm:$0xff] }
 0x41b   : > { %3057 = vmatprep.subr.mxu0 %v995_v39 }
 0x41c   : > { %3058 = vmatpush3.msra.mxu0 %v995_v39 }
 0x41d   : > { %3059 = vmatprep.subr.mxu0 %v993_v40 }
 0x41e   : > { %3060 = vmatpush3.msra.mxu0 %v993_v40 }
 0x41f   : > { %3075 = vmatprep.subr.mxu0 %v1235_v12 }
 0x469   : > { %v3044_v41 = vpop.f32.mrf.mxu0 }
 0x46a   : > { %v979_v42 = vmax.f32 %v3044_v41, 1e-30 }
 0x46b   : > { %v969_v43 = vpop.f32.mrf.mxu0 }
 0x46c   : > { %v978_v44 = vmax.f32 %v969_v43, 1e-30  ;;  %3305 = vrcp.f32 %v979_v42  ;;  %v1407_v42 = vld [vmem:[%s3998_s8 + $0x8] sm:$0xff] }
 0x46e   : > { %3307 = vrcp.f32 %v978_v44  ;;  %v1406_v44 = vld [vmem:[%s3998_s8] sm:$0xff] }
 0x479   : > { %v3306_v45 = vpop.eup %3305 }
 0x47a   : > { %v983_v48 = vmul.f32 %v3306_v45, %v3304_v30 }
 0x47b   : > { %v3308_v46 = vpop.eup %3307 }
 0x47c   : > { %v982_v47 = vmul.f32 %v3308_v46, %v3302_v29  ;;  %v1534_v46 = vlaneseq }
 0x47e   : > { %3061 = vmatprep.mubr.msk.f32.mxu0 %vm884_vm3, %v982_v47  ;;  %v1535_v47 = vshrl.u32 %v1534_v46, 7 }
 0x47f   : > { %3062 = vmatmul.mubr.msk.f32.vlgmr.msra.gmra.mxu0 %vm884_vm3, %v983_v48  ;;  %v1405_v48 = vld [vmem:[%s466_s27] sm:$0x1] }
 0x480   : > { %3076 = vmatpush3.msra.mxu0 %v1235_v12  ;;  %v1536_v49 = vsub.s32 0, %v1535_v47 }
 0x481   : > { %3077 = vmatprep.subr.mxu0 %v1234_v13 }
 0x482   : > { %3078 = vmatpush3.msra.mxu0 %v1234_v13  ;;  %v1537_v50 = vrot.slane %v1405_v48, %v1536_v49 }
 0x483   : > { %3079 = vmatprep.subr.mxu0 %v1233_v15 }
 0x484   : > { %3080 = vmatpush3.msra.mxu0 %v1233_v15 }
 0x485   : > { %3081 = vmatprep.subr.mxu0 %v1232_v16 }
 0x486   : > { %3082 = vmatpush3.msra.mxu0 %v1232_v16 }
 0x53f   : > { %v3063_v51 = vpop.f32.mrf.mxu0 }
 0x541   : > { %v1088_v52 = vpop.f32.mrf.mxu0 }
 0x542   : > { %3072 = vmatprep.mubr.msk.f32.mxu1 %vm591_vm2, %v1088_v52  ;;  %v2802_v52 = vld [vmem:[%s3514_s13 + $0x70] ss:$0 sm:$0xff] }
 0x543   : > { %3073 = vmatmul.mubr.msk.f32.vlgmr.msra.gmra.mxu1 %vm591_vm2, %v3063_v51 }
 0x544   : > { %3094 = vmatprep.mubr.msk.f32.mxu1 %vm3383_vm4, %v3382_v63  ;;  %3087 = vmatpush3.msra.mxu1 %v1326_v62 }
 0x545   : > { %3088 = vmatprep.subr.mxu1 %v3382_v63 }
 0x546   : > { %3089 = vmatpush3.msra.mxu1 %v1325_v0 }
 0x547   : > { %3090 = vmatprep.subr.mxu1 %v3382_v63 }
 0x603   : > { %v3074_v53 = vpop.f32.mrf.mxu1 }
 0x604   : > { %v1183_v55 = vadd.f32 %v3074_v53, %v3563_v21  ;;  %v1324_v21 = vld [vmem:[%s3514_s13 + $0x80] sm:$0xff] }
 0x605   : > { %v1173_v56 = vpop.f32.mrf.mxu1  ;;  %3091 = vmatpush3.msra.mxu1 %v1324_v21 }
 0x606   : > { %v1182_v57 = vadd.f32 %v1173_v56, %v3533_v14  ;;  %v1190_v58 = vadd.f32 %v2799_v54, %v1183_v55  ;;  %v1323_v14 = vld [vmem:[%s3514_s13 + $0x78] sm:$0xff]  ;;  %3092 = vmatprep.subr.mxu1 %v3382_v63 }
 0x607   : > { %3093 = vmatpush3.msra.mxu1 %v1323_v14 }
 0x608   : > { %v1196_v59 = vsel %vm591_vm2, %v1190_v58, 0.0  ;;  %v1189_v60 = vadd.f32 %v2799_v54, %v1182_v57  ;;  %3095 = vmatmul.mubr.msk.f32.vlgmr.msra.gmra.mxu1 %vm591_vm2, %v1322_v11 }
 0x609   : > { %1197 = vadd.xlane.f32.xlu1 %v1196_v59 }
 0x60a   : > { %v1193_v61 = vsel %vm591_vm2, %v1189_v60, 0.0 }
 0x60b   : > { %1194 = vadd.xlane.f32.xlu0 %v1193_v61 }
 0x61a   : > { %1538 = vrot.lane.b32.xlu1 %v1537_v50, %s3384_s26 }
 0x61e   : > { %1544 = vrot.lane.b32.xlu1 %v1537_v50, %s3386_s18 }
 0x692   : > { %v1198_v1 = vpop.xlane.xlu1 %1197 }
 0x693   : > { %v1201_v2 = vmul.f32 0.03125, %v1198_v1 }
 0x694   : > { %v1195_v3 = vpop.xlane.xlu0 %1194 }
 0x695   : > { %v1200_v4 = vmul.f32 0.03125, %v1195_v3  ;;  %v1203_v5 = vsub.f32 %v1190_v58, %v1201_v2 }
 0x696   : > { %v1539_v56 = vpop.permute.xlu1 %1538 }
 0x697   : > { %v1202_v6 = vsub.f32 %v1189_v60, %v1200_v4  ;;  %v1205_v9 = vmul.f32 %v1203_v5, %v1203_v5  ;;  %v1548_v57 = vsel %vm1547_vm5, %v1405_v48, %v1539_v56  ;;  %v2819_v48 = vld [vmem:[%s3514_s13 + $0xc0] ss:$0 sm:$0xff] }
 0x699   : > { %v1204_v7 = vmul.f32 %v1202_v6, %v1202_v6  ;;  %v1209_v10 = vsel %vm591_vm2, %v1205_v9, 0.0 }
 0x69a   : > { %v1545_v60 = vpop.permute.xlu1 %1544 }
 0x69b   : > { %v1206_v8 = vsel %vm591_vm2, %v1204_v7, 0.0  ;;  %v1411_v7 = vld [vmem:[%s4016_s29 + $0x8] sm:$0xff] }
 0x69c   : > { %1207 = vadd.xlane.f32.xlu0 %v1206_v8  ;;  %v1410_v8 = vld [vmem:[%s4016_s29] sm:$0xff] }
 0x6a0   : > { %1210 = vadd.xlane.f32.xlu0 %v1209_v10 }
 0x6b6   : > { %1541 = vrot.lane.b32.xlu0 %v1537_v50, %s3385_s28 }
 0x6c8   : > { %v1401_v31 = vpop.f32.mrf.mxu1 }
 0x6c9   : > { %v3742_v38 = vadd.f32 %v2805_v35, %v1401_v31 }
 0x6ca   : > { %v3096_v39 = vpop.f32.mrf.mxu1 }
 0x6cb   : > { %v1417_v40 = vmul.f32 %v1409_v36, %v3742_v38  ;;  %v1416_v41 = vmul.f32 %v1408_v37, %v3742_v38  ;;  %v1415_v43 = vmul.f32 %v1407_v42, %v3742_v38  ;;  %v1414_v45 = vmul.f32 %v1406_v44, %v3742_v38 }
 0x6cd   : > { %3097 = vmatprep.subr.msk.mxu0 %vm591_vm2, %v1417_v40 }
 0x725   : > { %v1208_v17 = vpop.xlane.xlu0 %1207 }
 0x726   : > { %v1212_v18 = vmul.f32 0.03125, %v1208_v17 }
 0x728   : > { %v1214_v19 = vadd.f32 1e-05, %v1212_v18 }
 0x729   : > { %v1211_v20 = vpop.xlane.xlu0 %1210 }
 0x72a   : > { %3309 = vrsqrt.f32 %v1214_v19  ;;  %v1213_v22 = vmul.f32 0.03125, %v1211_v20 }
 0x72c   : > { %v1215_v23 = vadd.f32 1e-05, %v1213_v22 }
 0x72d   : > { %v1542_v58 = vpop.permute.xlu0 %1541 }
 0x72e   : > { %3311 = vrsqrt.f32 %v1215_v23  ;;  %v1550_v59 = vsel %vm1549_vm6, %v1548_v57, %v1542_v58 }
 0x72f   : > { %v1552_v61 = vsel %vm1551_vm7, %v1550_v59, %v1545_v60 }
 0x730   : > { %v1556_v62 = vrot.slane %v1552_v61, %v1536_v49 }
 0x737   : > { %v3310_v24 = vpop.eup %3309 }
 0x738   : > { %v1218_v26 = vmul.f32 %v3310_v24, %v1202_v6  ;;  %v1412_v6 = vld [vmem:[%s4016_s29 + $0x10] sm:$0xff] }
 0x73a   : > { %v1224_v28 = vmul.f32 %v2800_v25, %v1218_v26 }
 0x73b   : > { %v3312_v29 = vpop.eup %3311 }
 0x73c   : > { %v1219_v30 = vmul.f32 %v3312_v29, %v1203_v5  ;;  %v3727_v32 = vadd.f32 %v2801_v27, %v1224_v28  ;;  %v1413_v5 = vld [vmem:[%s4015_s24 + $0x18] sm:$0xff]  ;;  %v1757_v28 = vld [vmem:[%s3514_s13 + $0xb0] sm:$0xff] }
 0x73d   : > { %3108 = vmatprep.subr.mxu1 %v1413_v5 }
 0x73e   : > { %v1225_v33 = vmul.f32 %v2800_v25, %v1219_v30  ;;  %3083 = vmatprep.mubr.msk.f32.mxu0 %vm591_vm2, %v3727_v32  ;;  %3109 = vmatpush3.msra.mxu1 %v1413_v5  ;;  %v1985_v5 = vld [vmem:[%s3514_s13 + $0x140] sm:$0xff] }
 0x73f   : > { %3110 = vmatprep.subr.mxu1 %v1412_v6 }
 0x740   : > { %v3731_v34 = vadd.f32 %v2801_v27, %v1225_v33  ;;  %3111 = vmatpush3.msra.mxu1 %v1412_v6  ;;  %v1758_v27 = vld [vmem:[%s3514_s13 + $0xb8] sm:$0xff] }
 0x741   : > { %3112 = vmatprep.subr.mxu1 %v1411_v7 }
 0x742   : > { %3084 = vmatmul.mubr.msk.f32.vlgmr.msra.gmra.mxu0 %vm591_vm2, %v3731_v34  ;;  %3113 = vmatpush3.msra.mxu1 %v1411_v7 }
 0x743   : > { %3098 = vmatpush3.xpose.msk.msra.mxu0 %vm591_vm2, %v1417_v40  ;;  %3114 = vmatprep.subr.mxu1 %v1410_v8 }
 0x744   : > { %3099 = vmatprep.subr.msk.mxu0 %vm591_vm2, %v1416_v41  ;;  %3115 = vmatpush3.msra.mxu1 %v1410_v8 }
 0x747   : > { %3100 = vmatpush3.xpose.msk.msra.mxu0 %vm591_vm2, %v1416_v41 }
 0x748   : > { %3101 = vmatprep.subr.msk.mxu0 %vm591_vm2, %v1415_v43 }
 0x74b   : > { %3102 = vmatpush3.xpose.msk.msra.mxu0 %vm591_vm2, %v1415_v43  ;;  %v1756_v43 = vld [vmem:[%s3514_s13 + $0xa8] sm:$0xff] }
 0x74c   : > { %3103 = vmatprep.subr.msk.mxu0 %vm591_vm2, %v1414_v45 }
 0x74f   : > { %3104 = vmatpush3.xpose.msk.msra.mxu0 %vm591_vm2, %v1414_v45 }
 0x750   : > { %3130 = vmatprep.subr.mxu0 %v1758_v27 }
 0x802   : > { %v3085_v51 = vpop.f32.mrf.mxu0 }
 0x803   : > { %v1319_v55 = vadd.f32 %v3085_v51, %v2802_v52 }
 0x804   : > { %v1313_v53 = vpop.f32.mrf.mxu0 }
 0x805   : > { %v1314_v54 = vadd.f32 %v2802_v52, %v1313_v53 }
 0x807   : > { %3105 = vmatprep.mubr.msk.f32.mxu0 %vm591_vm2, %v1314_v54 }
 0x808   : > { %3106 = vmatmul.mubr.msk.f32.vlgmr.msra.gmra.mxu0 %vm591_vm2, %v1319_v55 }
 0x809   : > { %3131 = vmatpush3.msra.mxu0 %v1758_v27  ;;  %v1981_v27 = vld [vmem:[%s3514_s13 + $0x120] sm:$0xff] }
 0x80a   : > { %3132 = vmatprep.subr.mxu0 %v1757_v28 }
 0x80b   : > { %3133 = vmatpush3.msra.mxu0 %v1757_v28  ;;  %v2822_v28 = vld [vmem:[%s3514_s13 + $0x118] ss:$0 sm:$0xff] }
 0x80c   : > { %3134 = vmatprep.subr.mxu0 %v1756_v43 }
 0x80d   : > { %3135 = vmatpush3.msra.mxu0 %v1756_v43 }
 0x8c8   : > { %v3107_v63 = vpop.f32.mrf.mxu0 }
 0x8c9   : > { %v1532_v0 = vmul.f32 0.35355338, %v3107_v63 }
 0x8ca   : > { %v1522_v21 = vpop.f32.mrf.mxu0 }
 0x8cb   : > { %v1531_v14 = vmul.f32 0.35355338, %v1522_v21  ;;  %v1558_v1 = vadd.f32 %v1556_v62, %v1532_v0  ;;  %v1892_v0 = vld [vmem:[%s3514_s13 + $0x110] sm:$0xff]  ;;  %v1891_v21 = vld [vmem:[%s3514_s13 + $0x108] sm:$0xff] }
 0x8cd   : > { %v1562_v2 = vsel %vm591_vm2, %v1558_v1, -inf  ;;  %v1557_v3 = vadd.f32 %v1556_v62, %v1531_v14  ;;  %v1890_v14 = vld [vmem:[%s3514_s13 + $0x100] sm:$0xff] }
 0x8ce   : > { %1563 = vmax.xlane.f32.xlu0 %v1562_v2  ;;  %v1988_v2 = vld [vmem:[%s3514_s13 + $0x158] sm:$0xff] }
 0x8cf   : > { %v1559_v4 = vsel %vm591_vm2, %v1557_v3, -inf }
 0x8d0   : > { %1560 = vmax.xlane.f32.xlu1 %v1559_v4  ;;  %v1986_v4 = vld [vmem:[%s3514_s13 + $0x148] sm:$0xff] }
 0x8e1   : > { %1426 = vrot.lane.b32.xlu1 %v1408_v37, %s3379_s20 }
 0x8e4   : > { %1428 = vrot.lane.b32.xlu0 %v1409_v36, %s3379_s20 }
 0x8e5   : > { %1424 = vrot.lane.b32.xlu1 %v1407_v42, %s3379_s20 }
 0x8e8   : > { %1422 = vrot.lane.b32.xlu0 %v1406_v44, %s3379_s20  ;;  %v1755_v44 = vld [vmem:[%s3514_s13 + $0xa0] sm:$0xff] }
 0x8e9   : > { %3136 = vmatprep.subr.mxu0 %v1755_v44 }
 0x8ea   : > { %3137 = vmatpush3.msra.mxu0 %v1755_v44 }
 0x8eb   : > { %3152 = vmatprep.subr.mxu0 %v1988_v2 }
 0x957   : > { %v1564_v9 = vpop.xlane.xlu0 %1563 }
 0x958   : > { %v1566_v10 = vsub.f32 %v1558_v1, %v1564_v9  ;;  %v1889_v1 = vld [vmem:[%s3514_s13 + $0xf8] sm:$0xff] }
 0x959   : > { %v1561_v11 = vpop.xlane.xlu1 %1560 }
 0x95a   : > { %v1565_v12 = vsub.f32 %v1557_v3, %v1561_v11  ;;  %v1569_v13 = vmul.f32 1.442695, %v1566_v10  ;;  %v1987_v3 = vld [vmem:[%s3514_s13 + $0x150] sm:$0xff] }
 0x95b   : > { %v1429_v15 = vpop.permute.xlu0 %1428 }
 0x95c   : > { %v1567_v16 = vmul.f32 1.442695, %v1565_v12  ;;  %v1437_v17 = vmul.f32 %v1429_v15, %v3742_v38 }
 0x95d   : > { %v1427_v18 = vpop.permute.xlu1 %1426 }
 0x95e   : > { %3313 = vpow2.f32 %v1567_v16  ;;  %v1436_v19 = vmul.f32 %v1427_v18, %v3742_v38  ;;  %1668 = vrot.lane.b32.xlu1 %v1437_v17, %s3380_s30 }
 0x95f   : > { %3315 = vpow2.f32 %v1569_v13  ;;  %v1423_v20 = vpop.permute.xlu0 %1422  ;;  %v2820_v13 = vld [vmem:[%s3514_s13 + $0xd8] ss:$0 sm:$0xff] }
 0x960   : > { %1666 = vrot.lane.b32.xlu0 %v1436_v19, %s3380_s30  ;;  %v1434_v23 = vmul.f32 %v1423_v20, %v3742_v38  ;;  %v2821_v19 = vld [vmem:[%s3514_s13 + $0xe0] ss:$0 sm:$0xff] }
 0x961   : > { %v1425_v22 = vpop.permute.xlu1 %1424 }
 0x962   : > { %v1435_v24 = vmul.f32 %v1425_v22, %v3742_v38 }
 0x964   : > { %1662 = vrot.lane.b32.xlu0 %v1434_v23, %s3380_s30  ;;  %1664 = vrot.lane.b32.xlu1 %v1435_v24, %s3380_s30  ;;  %v1984_v24 = vld [vmem:[%s3514_s13 + $0x138] sm:$0xff] }
 0x96b   : > { %v3314_v25 = vpop.eup %3313 }
 0x96c   : > { %v3316_v26 = vpop.eup %3315  ;;  %3116 = vmatprep.mubr.msk.f32.mxu1 %vm591_vm2, %v3314_v25 }
 0x96d   : > { %3117 = vmatmul.mubr.msk.f32.vlgmr.msra.gmra.mxu1 %vm591_vm2, %v3316_v26 }
 0x9d0   : > { %v1669_v29 = vpop.permute.xlu1 %1668 }
 0x9d1   : > { %3119 = vmatprep.subr.mxu1 %v1669_v29 }
 0x9d2   : > { %v1667_v30 = vpop.permute.xlu0 %1666  ;;  %3120 = vmatpush3.msra.mxu1 %v1669_v29 }
 0x9d3   : > { %3121 = vmatprep.subr.mxu1 %v1667_v30 }
 0x9d4   : > { %3122 = vmatpush3.msra.mxu1 %v1667_v30 }
 0x9d6   : > { %v1665_v33 = vpop.permute.xlu1 %1664  ;;  %v1663_v35 = vpop.permute.xlu0 %1662 }
 0x9d7   : > { %3123 = vmatprep.subr.mxu1 %v1665_v33 }
 0x9d8   : > { %3124 = vmatpush3.msra.mxu1 %v1665_v33 }
 0x9d9   : > { %3125 = vmatprep.subr.mxu1 %v1663_v35 }
 0x9da   : > { %3126 = vmatpush3.msra.mxu1 %v1663_v35 }
 0x9db   : > { %3141 = vmatprep.subr.mxu1 %v1892_v0 }
 0xa2d   : > { %v3118_v31 = vpop.f32.mrf.mxu1 }
 0xa2e   : > { %v1653_v36 = vmax.f32 %v3118_v31, 1e-30 }
 0xa2f   : > { %v1643_v37 = vpop.f32.mrf.mxu1 }
 0xa30   : > { %v1652_v38 = vmax.f32 %v1643_v37, 1e-30  ;;  %3317 = vrcp.f32 %v1653_v36 }
 0xa32   : > { %3319 = vrcp.f32 %v1652_v38  ;;  %v2827_v38 = vld [vmem:[%s3514_s13 + $0x160] ss:$0 sm:$0xff] }
 0xa3d   : > { %v3318_v39 = vpop.eup %3317 }
 0xa3e   : > { %v1657_v42 = vmul.f32 %v3318_v39, %v3316_v26  ;;  %v1982_v26 = vld [vmem:[%s3514_s13 + $0x128] sm:$0xff] }
 0xa3f   : > { %v3320_v40 = vpop.eup %3319 }
 0xa40   : > { %v1656_v41 = vmul.f32 %v3320_v40, %v3314_v25  ;;  %v1983_v25 = vld [vmem:[%s3514_s13 + $0x130] sm:$0xff] }
 0xa42   : > { %3127 = vmatprep.mubr.msk.f32.mxu1 %vm591_vm2, %v1656_v41 }
 0xa43   : > { %3128 = vmatmul.mubr.msk.f32.vlgmr.msra.gmra.mxu1 %vm591_vm2, %v1657_v42 }
 0xa44   : > { %3142 = vmatpush3.msra.mxu1 %v1892_v0  ;;  %v2829_v0 = vld [vmem:[%s3514_s13 + $0xf0] ss:$0 sm:$0xff] }
 0xa45   : > { %3143 = vmatprep.subr.mxu1 %v1891_v21 }
 0xa46   : > { %3144 = vmatpush3.msra.mxu1 %v1891_v21 }
 0xa47   : > { %3145 = vmatprep.subr.mxu1 %v1890_v14 }
 0xa48   : > { %3146 = vmatpush3.msra.mxu1 %v1890_v14 }
 0xa49   : > { %3147 = vmatprep.subr.mxu1 %v1889_v1 }
 0xa4a   : > { %3148 = vmatpush3.msra.mxu1 %v1889_v1 }
 0xb03   : > { %v3129_v45 = vpop.f32.mrf.mxu1 }
 0xb05   : > { %v1746_v46 = vpop.f32.mrf.mxu1 }
 0xb06   : > { %3138 = vmatprep.mubr.msk.f32.mxu0 %vm591_vm2, %v1746_v46 }
 0xb07   : > { %3139 = vmatmul.mubr.msk.f32.vlgmr.msra.gmra.mxu0 %vm591_vm2, %v3129_v45 }
 0xb08   : > { %3153 = vmatpush3.msra.mxu0 %v1988_v2 }
 0xb09   : > { %3154 = vmatprep.subr.mxu0 %v1987_v3 }
 0xb0a   : > { %3155 = vmatpush3.msra.mxu0 %v1987_v3 }
 0xb0b   : > { %3156 = vmatprep.subr.mxu0 %v1986_v4 }
 0xb0c   : > { %3157 = vmatpush3.msra.mxu0 %v1986_v4 }
 0xb0d   : > { %3158 = vmatprep.subr.mxu0 %v1985_v5 }
 0xb0e   : > { %3159 = vmatpush3.msra.mxu0 %v1985_v5 }
 0xb0f   : > { %3160 = vmatprep.subr.mxu0 %v1984_v24 }
 0xb10   : > { %3161 = vmatpush3.msra.mxu0 %v1984_v24 }
 0xb11   : > { %3162 = vmatprep.subr.mxu0 %v1983_v25 }
 0xb12   : > { %3163 = vmatpush3.msra.mxu0 %v1983_v25 }
 0xb13   : > { %3164 = vmatprep.subr.mxu0 %v1982_v26 }
 0xb14   : > { %3165 = vmatpush3.msra.mxu0 %v1982_v26 }
 0xb15   : > { %3166 = vmatprep.subr.mxu0 %v1981_v27 }
 0xb16   : > { %3167 = vmatpush3.msra.mxu0 %v1981_v27 }
 0xbc7   : > { %v3140_v47 = vpop.f32.mrf.mxu0 }
 0xbc8   : > { %v1841_v49 = vadd.f32 %v3140_v47, %v3731_v34 }
 0xbc9   : > { %v1831_v50 = vpop.f32.mrf.mxu0 }
 0xbca   : > { %v1840_v51 = vadd.f32 %v1831_v50, %v3727_v32  ;;  %v1848_v52 = vadd.f32 %v2819_v48, %v1841_v49 }
 0xbcc   : > { %v1854_v53 = vsel %vm591_vm2, %v1848_v52, 0.0  ;;  %v1847_v54 = vadd.f32 %v2819_v48, %v1840_v51 }
 0xbcd   : > { %1855 = vadd.xlane.f32.xlu0 %v1854_v53 }
 0xbce   : > { %v1851_v55 = vsel %vm591_vm2, %v1847_v54, 0.0 }
 0xbcf   : > { %1852 = vadd.xlane.f32.xlu1 %v1851_v55 }
 0xc56   : > { %v1856_v56 = vpop.xlane.xlu0 %1855 }
 0xc57   : > { %v1858_v57 = vmul.f32 0.03125, %v1856_v56 }
 0xc58   : > { %v1853_v58 = vpop.xlane.xlu1 %1852 }
 0xc59   : > { %v1860_v59 = vsub.f32 %v1848_v52, %v1858_v57  ;;  %v1857_v34 = vmul.f32 0.03125, %v1853_v58 }
 0xc5b   : > { %v1859_v60 = vsub.f32 %v1847_v54, %v1857_v34  ;;  %v1862_v61 = vmul.f32 %v1860_v59, %v1860_v59 }
 0xc5d   : > { %v1866_v32 = vsel %vm591_vm2, %v1862_v61, 0.0  ;;  %v1861_v62 = vmul.f32 %v1859_v60, %v1859_v60 }
 0xc5e   : > { %1867 = vadd.xlane.f32.xlu1 %v1866_v32  ;;  %v2828_v32 = vld [vmem:[%s3514_s13 + $0xe8] ss:$0 sm:$0xff] }
 0xc5f   : > { %v1863_v63 = vsel %vm591_vm2, %v1861_v62, 0.0 }
 0xc60   : > { %1864 = vadd.xlane.f32.xlu0 %v1863_v63 }
 0xce7   : > { %v1868_v6 = vpop.xlane.xlu1 %1867 }
 0xce8   : > { %v1870_v7 = vmul.f32 0.03125, %v1868_v6 }
 0xce9   : > { %v1865_v8 = vpop.xlane.xlu0 %1864 }
 0xcea   : > { %v1872_v9 = vadd.f32 1e-05, %v1870_v7  ;;  %v1869_v10 = vmul.f32 0.03125, %v1865_v8 }
 0xcec   : > { %3321 = vrsqrt.f32 %v1872_v9  ;;  %v1871_v11 = vadd.f32 1e-05, %v1869_v10 }
 0xcee   : > { %3323 = vrsqrt.f32 %v1871_v11 }
 0xcf9   : > { %v3322_v12 = vpop.eup %3321 }
 0xcfa   : > { %v1876_v15 = vmul.f32 %v3322_v12, %v1860_v59 }
 0xcfb   : > { %v3324_v16 = vpop.eup %3323 }
 0xcfc   : > { %v1875_v17 = vmul.f32 %v3324_v16, %v1859_v60  ;;  %v1882_v18 = vmul.f32 %v2820_v13, %v1876_v15 }
 0xcfe   : > { %v1881_v20 = vmul.f32 %v2820_v13, %v1875_v17  ;;  %v1888_v23 = vadd.f32 %v2821_v19, %v1882_v18 }
 0xd00   : > { %v1887_v22 = vadd.f32 %v2821_v19, %v1881_v20 }
 0xd02   : > { %3149 = vmatprep.mubr.msk.f32.mxu1 %vm591_vm2, %v1887_v22 }
 0xd03   : > { %3150 = vmatmul.mubr.msk.f32.vlgmr.msra.gmra.mxu1 %vm591_vm2, %v1888_v23 }
 0xdc3   : > { %v3151_v29 = vpop.f32.mrf.mxu1 }
 0xdc4   : > { %v1976_v30 = vadd.f32 %v3151_v29, %v2822_v28 }
 0xdc5   : > { %v1970_v33 = vpop.f32.mrf.mxu1 }
 0xdc6   : > { %v1971_v35 = vadd.f32 %v2822_v28, %v1970_v33  ;;  %v1980_v36 = vmax.f32 %v1976_v30, 0.0 }
 0xdc8   : > { %v1979_v31 = vmax.f32 %v1971_v35, 0.0 }
 0xdca   : > { %3168 = vmatprep.mubr.msk.f32.mxu0 %vm884_vm3, %v1979_v31 }
 0xdcb   : > { %3169 = vmatmul.mubr.msk.f32.vlgmr.msra.gmra.mxu0 %vm884_vm3, %v1980_v36 }
 0xe8b   : > { %v3170_v37 = vpop.f32.mrf.mxu0 }
 0xe8c   : > { %v2071_v39 = vadd.f32 %v3170_v37, %v1888_v23 }
 0xe8d   : > { %v2061_v40 = vpop.f32.mrf.mxu0 }
 0xe8e   : > { %v2070_v41 = vadd.f32 %v2061_v40, %v1887_v22  ;;  %v2078_v42 = vadd.f32 %v2827_v38, %v2071_v39 }
 0xe90   : > { %v2084_v43 = vsel %vm591_vm2, %v2078_v42, 0.0  ;;  %v2077_v44 = vadd.f32 %v2827_v38, %v2070_v41 }
 0xe91   : > { %2085 = vadd.xlane.f32.xlu1 %v2084_v43 }
 0xe92   : > { %v2081_v45 = vsel %vm591_vm2, %v2077_v44, 0.0 }
 0xe93   : > { %2082 = vadd.xlane.f32.xlu0 %v2081_v45 }
 0xf1a   : > { %v2086_v46 = vpop.xlane.xlu1 %2085 }
 0xf1b   : > { %v2088_v47 = vmul.f32 0.03125, %v2086_v46 }
 0xf1c   : > { %v2083_v48 = vpop.xlane.xlu0 %2082 }
 0xf1d   : > { %v2090_v49 = vsub.f32 %v2078_v42, %v2088_v47  ;;  %v2087_v50 = vmul.f32 0.03125, %v2083_v48 }
 0xf1f   : > { %v2089_v51 = vsub.f32 %v2077_v44, %v2087_v50  ;;  %v2092_v52 = vmul.f32 %v2090_v49, %v2090_v49 }
 0xf21   : > { %v2096_v53 = vsel %vm591_vm2, %v2092_v52, 0.0  ;;  %v2091_v54 = vmul.f32 %v2089_v51, %v2089_v51 }
 0xf22   : > { %2097 = vadd.xlane.f32.xlu1 %v2096_v53 }
 0xf23   : > { %v2093_v55 = vsel %vm591_vm2, %v2091_v54, 0.0 }
 0xf24   : > { %2094 = vadd.xlane.f32.xlu0 %v2093_v55 }
 0xfab   : > { %v2098_v56 = vpop.xlane.xlu1 %2097 }
 0xfac   : > { %v2100_v57 = vmul.f32 0.03125, %v2098_v56 }
 0xfad   : > { %v2095_v58 = vpop.xlane.xlu0 %2094 }
 0xfae   : > { %v2102_v59 = vadd.f32 1e-05, %v2100_v57  ;;  %v2099_v34 = vmul.f32 0.03125, %v2095_v58 }
 0xfb0   : > { %3325 = vrsqrt.f32 %v2102_v59  ;;  %v2101_v60 = vadd.f32 1e-05, %v2099_v34 }
 0xfb2   : > { %3327 = vrsqrt.f32 %v2101_v60 }
 0xfbd   : > { %v3326_v61 = vpop.eup %3325 }
 0xfbe   : > { %v2106_v62 = vmul.f32 %v3326_v61, %v2090_v49 }
 0xfbf   : > { %v3328_v63 = vpop.eup %3327 }
 0xfc0   : > { %v2112_v21 = vmul.f32 %v2828_v32, %v2106_v62  ;;  %v2105_v14 = vmul.f32 %v3328_v63, %v2089_v51 }
 0xfc2   : > { %v2118_v1 = vadd.f32 %v2829_v0, %v2112_v21  ;;  %v2111_v2 = vmul.f32 %v2828_v32, %v2105_v14  ;;  %2124 = sbr.rel (%p2830_p8) target bundleno = 4040 (0xfc8), region = 76 }
 0xfc4   : > { %2120 = vst.msk [vmem:[#allocation2 + $0x8] sm:$0xff] %vm591_vm2, %v2118_v1  ;;  %v2117_v3 = vadd.f32 %v2829_v0, %v2111_v2 }
 0xfc6   : > { %2119 = vst.msk [vmem:[#allocation2] sm:$0xff] %vm591_vm2, %v2117_v3 }
 0xfc7   : > { %2125 = vst.msk [vmem:[#allocation3] sm:$0xff] %vm591_vm2, %v2117_v3  ;;  %2126 = vst.msk [vmem:[#allocation3 + $0x8] sm:$0xff] %vm591_vm2, %v2118_v1 }
 0xfc8 PF: > { %p2831_p9 = scmp.ne.s32.totalorder %s3361_s21, 3 }
 0xfc9   : > { %s4017_s30 = sld [smem:[#allocation10_spill]] (!%p2831_p9)  ;;  %s3387_s11 = smov (!%p2831_p9), 32  }
 0xfca   : > { %2130 = sbr.rel (%p2831_p9) target bundleno = 5334 (0x14d6), region = 80 }
 0xfcf   : > { %v2131_v4 = vld [vmem:[#allocation3] sm:$0xff]  ;;  %v2150_v5 = vld [vmem:[%s4017_s30 + $0x38] sm:$0xff]  ;;  %v2148_v8 = vld [vmem:[%s4017_s30 + $0x28] sm:$0xff]  ;;  %vm2661_vm8 = vcmask 72704  }
 0xfd0   : > { %2135 = vrot.lane.b32.xlu0 %v2131_v4, %s3387_s11  ;;  %3171 = vmatprep.subr.mxu0 %v2150_v5  ;;  %v2149_v6 = vld [vmem:[%s4017_s30 + $0x30] sm:$0xff]  ;;  %v2132_v7 = vld [vmem:[#allocation3 + $0x8] sm:$0xff]  ;;  %v2147_v9 = vld [vmem:[%s4017_s30 + $0x20] sm:$0xff] }
 0xfd1   : > { %3172 = vmatpush3.msra.mxu0 %v2150_v5  ;;  %v2146_v10 = vld [vmem:[%s4017_s30 + $0x18] sm:$0xff]  ;;  %v2145_v11 = vld [vmem:[%s4017_s30 + $0x10] sm:$0xff]  ;;  %v2144_v12 = vld [vmem:[%s4017_s30 + $0x8] sm:$0xff] }
 0xfd2   : > { %3173 = vmatprep.subr.mxu0 %v2149_v6  ;;  %v2143_v13 = vld [vmem:[%s4017_s30] sm:$0xff]  ;;  %v2241_v20 = vld [vmem:[%s4017_s30 + $0x58] sm:$0xff]  ;;  %v2240_v22 = vld [vmem:[%s4017_s30 + $0x50] sm:$0xff] }
 0xfd3   : > { %3174 = vmatpush3.msra.mxu0 %v2149_v6  ;;  %v2242_v19 = vld [vmem:[%s4017_s30 + $0x60] sm:$0xff]  ;;  %v2239_v23 = vld [vmem:[%s4017_s30 + $0x48] sm:$0xff]  ;;  %v2338_v31 = vld [vmem:[%s4017_s30 + $0x98] sm:$0xff]  ;;  %v3388_v6 = vmov 8  }
 0xfd4   : > { %2137 = vrot.lane.b32.xlu0 %v2132_v7, %s3387_s11  ;;  %3175 = vmatprep.subr.mxu0 %v2148_v8  ;;  %v2340_v24 = vld [vmem:[%s4017_s30 + $0xa8] sm:$0xff]  ;;  %v2832_v25 = vld [vmem:[%s4017_s30 + $0x40] ss:$0 sm:$0xff]  ;;  %v2337_v36 = vld [vmem:[%s4017_s30 + $0x90] sm:$0xff] }
 0xfd5   : > { %3176 = vmatpush3.msra.mxu0 %v2148_v8  ;;  %3190 = vmatprep.subr.mxu1 %v2242_v19  ;;  %v2339_v35 = vld [vmem:[%s4017_s30 + $0xa0] sm:$0xff]  ;;  %v2336_v37 = vld [vmem:[%s4017_s30 + $0x88] sm:$0xff]  ;;  %v2334_v39 = vld [vmem:[%s4017_s30 + $0x78] sm:$0xff] }
 0xfd6   : > { %3177 = vmatprep.subr.mxu0 %v2147_v9  ;;  %3191 = vmatpush3.msra.mxu1 %v2242_v19  ;;  %v2335_v38 = vld [vmem:[%s4017_s30 + $0x80] sm:$0xff]  ;;  %v2333_v40 = vld [vmem:[%s4017_s30 + $0x70] sm:$0xff]  ;;  %v2837_v44 = vld [vmem:[%s4017_s30 + $0x68] ss:$0 sm:$0xff] }
 0xfd7   : > { %3178 = vmatpush3.msra.mxu0 %v2147_v9  ;;  %3192 = vmatprep.subr.mxu1 %v2241_v20  ;;  %v2432_v48 = vld [vmem:[%s4017_s30 + $0xd0] sm:$0xff]  ;;  %v2431_v49 = vld [vmem:[%s4017_s30 + $0xc8] sm:$0xff]  ;;  %v2430_v50 = vld [vmem:[%s4017_s30 + $0xc0] sm:$0xff] }
 0xfd8   : > { %3179 = vmatprep.subr.mxu0 %v2146_v10  ;;  %3193 = vmatpush3.msra.mxu1 %v2241_v20  ;;  %v2429_v51 = vld [vmem:[%s4017_s30 + $0xb8] sm:$0xff]  ;;  %v2529_v53 = vld [vmem:[%s4017_s30 + $0x110] sm:$0xff]  ;;  %v2528_v54 = vld [vmem:[%s4017_s30 + $0x108] sm:$0xff] }
 0xfd9   : > { %3180 = vmatpush3.msra.mxu0 %v2146_v10  ;;  %3194 = vmatprep.subr.mxu1 %v2240_v22  ;;  %v2530_v52 = vld [vmem:[%s4017_s30 + $0x118] sm:$0xff]  ;;  %v2527_v55 = vld [vmem:[%s4017_s30 + $0x100] sm:$0xff]  ;;  %v2838_v56 = vld [vmem:[%s4017_s30 + $0xb0] ss:$0 sm:$0xff] }
 0xfda   : > { %3181 = vmatprep.subr.mxu0 %v2145_v11  ;;  %3195 = vmatpush3.msra.mxu1 %v2240_v22  ;;  %v2526_v32 = vld [vmem:[%s4017_s30 + $0xf8] sm:$0xff]  ;;  %v2525_v62 = vld [vmem:[%s4017_s30 + $0xf0] sm:$0xff]  ;;  %v2524_v63 = vld [vmem:[%s4017_s30 + $0xe8] sm:$0xff] }
 0xfdb   : > { %3182 = vmatpush3.msra.mxu0 %v2145_v11  ;;  %3196 = vmatprep.subr.mxu1 %v2239_v23  ;;  %v2523_v0 = vld [vmem:[%s4017_s30 + $0xe0] sm:$0xff]  ;;  %v2843_v2 = vld [vmem:[%s4017_s30 + $0xd8] ss:$0 sm:$0xff] }
 0xfdc   : > { %3183 = vmatprep.subr.mxu0 %v2144_v12  ;;  %3197 = vmatpush3.msra.mxu1 %v2239_v23  ;;  %v2844_v7 = vld [vmem:[%s4017_s30 + $0x120] ss:$0 sm:$0xff] }
 0xfdd   : > { %3184 = vmatpush3.msra.mxu0 %v2144_v12  ;;  %3201 = vmatprep.subr.mxu1 %v2340_v24 }
 0xfde   : > { %3185 = vmatprep.subr.mxu0 %v2143_v13  ;;  %3329 = vset.pattern.permute.xlu1 %v3388_v6 }
 0xfdf   : > { %3186 = vmatpush3.msra.mxu0 %v2143_v13  ;;  %3330 = vset.pattern.permute.xlu0 %v3388_v6 }
 0xfe0   : > { %3231 = vmatprep.subr.mxu0 %v2530_v52 }
0x1042   : > { %v2136_v15 = vpop.permute.xlu0 %2135 }
0x1043   : > { %v2141_v16 = vsel %vm591_vm2, %v2117_v3, %v2136_v15 }
0x1044   : > { %3187 = vmatprep.mubr.msk.f32.mxu0 %vm884_vm3, %v2141_v16 }
0x1046   : > { %v2138_v17 = vpop.permute.xlu0 %2137 }
0x1047   : > { %v2142_v18 = vsel %vm591_vm2, %v2118_v1, %v2138_v17 }
0x1048   : > { %3188 = vmatmul.mubr.msk.f32.vlgmr.msra.gmra.mxu0 %vm884_vm3, %v2142_v18 }
0x1049   : > { %3232 = vmatpush3.msra.mxu0 %v2530_v52 }
0x104a   : > { %3233 = vmatprep.subr.mxu0 %v2529_v53 }
0x104b   : > { %3234 = vmatpush3.msra.mxu0 %v2529_v53 }
0x104c   : > { %3235 = vmatprep.subr.mxu0 %v2528_v54 }
0x104d   : > { %3236 = vmatpush3.msra.mxu0 %v2528_v54 }
0x104e   : > { %3237 = vmatprep.subr.mxu0 %v2527_v55 }
0x104f   : > { %3238 = vmatpush3.msra.mxu0 %v2527_v55 }
0x1050   : > { %3239 = vmatprep.subr.mxu0 %v2526_v32 }
0x1051   : > { %3240 = vmatpush3.msra.mxu0 %v2526_v32 }
0x1052   : > { %3241 = vmatprep.subr.mxu0 %v2525_v62 }
0x1053   : > { %3242 = vmatpush3.msra.mxu0 %v2525_v62 }
0x1054   : > { %3243 = vmatprep.subr.mxu0 %v2524_v63 }
0x1055   : > { %3244 = vmatpush3.msra.mxu0 %v2524_v63 }
0x1056   : > { %3245 = vmatprep.subr.mxu0 %v2523_v0 }
0x1057   : > { %3246 = vmatpush3.msra.mxu0 %v2523_v0 }
0x1108   : > { %v3189_v26 = vpop.f32.mrf.mxu0 }
0x1109   : > { %v2234_v27 = vadd.f32 %v3189_v26, %v2832_v25 }
0x110a   : > { %v2228_v28 = vpop.f32.mrf.mxu0 }
0x110b   : > { %v2229_v29 = vadd.f32 %v2832_v25, %v2228_v28  ;;  %v2238_v33 = vmax.f32 %v2234_v27, 0.0  ;;  %v2643_v25 = vld [vmem:[%s3495_s15] sm:$0xff] }
0x110d   : > { %v2237_v30 = vmax.f32 %v2229_v29, 0.0 }
0x110f   : > { %3198 = vmatprep.mubr.msk.f32.mxu1 %vm591_vm2, %v2237_v30  ;;  %v2644_v30 = vld [vmem:[%s3495_s15 + $0x8] sm:$0xff] }
0x1110   : > { %3199 = vmatmul.mubr.msk.f32.vlgmr.msra.gmra.mxu1 %vm591_vm2, %v2238_v33 }
0x1111   : > { %3202 = vmatpush3.msra.mxu1 %v2340_v24 }
0x1112   : > { %3203 = vmatprep.subr.mxu1 %v2339_v35 }
0x1113   : > { %3204 = vmatpush3.msra.mxu1 %v2339_v35 }
0x1114   : > { %3205 = vmatprep.subr.mxu1 %v2338_v31 }
0x1115   : > { %3206 = vmatpush3.msra.mxu1 %v2338_v31 }
0x1116   : > { %3207 = vmatprep.subr.mxu1 %v2337_v36 }
0x1117   : > { %3208 = vmatpush3.msra.mxu1 %v2337_v36 }
0x1118   : > { %3209 = vmatprep.subr.mxu1 %v2336_v37 }
0x1119   : > { %3210 = vmatpush3.msra.mxu1 %v2336_v37 }
0x111a   : > { %3211 = vmatprep.subr.mxu1 %v2335_v38 }
0x111b   : > { %3212 = vmatpush3.msra.mxu1 %v2335_v38 }
0x111c   : > { %3213 = vmatprep.subr.mxu1 %v2334_v39 }
0x111d   : > { %3214 = vmatpush3.msra.mxu1 %v2334_v39 }
0x111e   : > { %3215 = vmatprep.subr.mxu1 %v2333_v40 }
0x111f   : > { %3216 = vmatpush3.msra.mxu1 %v2333_v40 }
0x1120   : > { %3220 = vmatprep.subr.mxu1 %v2432_v48 }
0x11d0   : > { %v3200_v41 = vpop.f32.mrf.mxu1 }
0x11d1   : > { %v2325_v42 = vadd.f32 %v3200_v41, %v2142_v18 }
0x11d2   : > { %v2315_v43 = vpop.f32.mrf.mxu1 }
0x11d3   : > { %v2324_v45 = vadd.f32 %v2315_v43, %v2141_v16  ;;  %v2332_v47 = vadd.f32 %v2837_v44, %v2325_v42 }
0x11d5   : > { %v2331_v46 = vadd.f32 %v2837_v44, %v2324_v45 }
0x11d7   : > { %3217 = vmatprep.mubr.msk.f32.mxu1 %vm884_vm3, %v2331_v46 }
0x11d8   : > { %3218 = vmatmul.mubr.msk.f32.vlgmr.msra.gmra.mxu1 %vm884_vm3, %v2332_v47 }
0x11d9   : > { %3221 = vmatpush3.msra.mxu1 %v2432_v48 }
0x11da   : > { %3222 = vmatprep.subr.mxu1 %v2431_v49 }
0x11db   : > { %3223 = vmatpush3.msra.mxu1 %v2431_v49 }
0x11dc   : > { %3224 = vmatprep.subr.mxu1 %v2430_v50 }
0x11dd   : > { %3225 = vmatpush3.msra.mxu1 %v2430_v50 }
0x11de   : > { %3226 = vmatprep.subr.mxu1 %v2429_v51 }
0x11df   : > { %3227 = vmatpush3.msra.mxu1 %v2429_v51 }
0x1298   : > { %v3219_v57 = vpop.f32.mrf.mxu1 }
0x1299   : > { %v2424_v58 = vadd.f32 %v3219_v57, %v2838_v56 }
0x129a   : > { %v2418_v59 = vpop.f32.mrf.mxu1 }
0x129b   : > { %v2419_v34 = vadd.f32 %v2838_v56, %v2418_v59  ;;  %v2428_v61 = vmax.f32 %v2424_v58, 0.0 }
0x129d   : > { %v2427_v60 = vmax.f32 %v2419_v34, 0.0 }
0x129f   : > { %3228 = vmatprep.mubr.msk.f32.mxu1 %vm591_vm2, %v2427_v60 }
0x12a0   : > { %3229 = vmatmul.mubr.msk.f32.vlgmr.msra.gmra.mxu1 %vm591_vm2, %v2428_v61 }
0x1360   : > { %v3230_v21 = vpop.f32.mrf.mxu1 }
0x1361   : > { %v2515_v14 = vadd.f32 %v3230_v21, %v2332_v47 }
0x1362   : > { %v2505_v1 = vpop.f32.mrf.mxu1 }
0x1363   : > { %v2514_v3 = vadd.f32 %v2505_v1, %v2331_v46  ;;  %v2522_v5 = vadd.f32 %v2843_v2, %v2515_v14 }
0x1365   : > { %v2521_v4 = vadd.f32 %v2843_v2, %v2514_v3 }
0x1367   : > { %3247 = vmatprep.mubr.msk.f32.mxu0 %vm884_vm3, %v2521_v4 }
0x1368   : > { %3248 = vmatmul.mubr.msk.f32.vlgmr.msra.gmra.mxu0 %vm884_vm3, %v2522_v5 }
0x1428   : > { %v3249_v8 = vpop.f32.mrf.mxu0 }
0x1429   : > { %v2614_v9 = vadd.f32 %v3249_v8, %v2844_v7 }
0x142a   : > { %v2608_v10 = vpop.f32.mrf.mxu0 }
0x142b   : > { %v2848_v11 = vmul.f32 -1.442695, %v2614_v9  ;;  %v2609_v12 = vadd.f32 %v2844_v7, %v2608_v10 }
0x142d   : > { %3331 = vpow2.f32 %v2848_v11  ;;  %v2847_v13 = vmul.f32 -1.442695, %v2609_v12 }
0x142f   : > { %3333 = vpow2.f32 %v2847_v13 }
0x143a   : > { %v3332_v15 = vpop.eup %3331 }
0x143b   : > { %v2624_v16 = vadd.f32 1.0, %v3332_v15 }
0x143c   : > { %v3334_v17 = vpop.eup %3333 }
0x143d   : > { %3335 = vrcp.f32 %v2624_v16  ;;  %v2623_v18 = vadd.f32 1.0, %v3334_v17 }
0x143f   : > { %3337 = vrcp.f32 %v2623_v18 }
0x144a   : > { %v3336_v19 = vpop.eup %3335 }
0x144b   : > { %2636 = vperm.xlu1 %3329, %v3336_v19   ;;  %v2642_v23 = vsub.f32 1.0, %v3336_v19 }
0x144c   : > { %v3338_v20 = vpop.eup %3337 }
0x144d   : > { %v2641_v22 = vsub.f32 1.0, %v3338_v20 }
0x144f   : > { %2631 = vperm.xlu1 %3329, %v3338_v20   ;;  %2647 = vperm.xlu0 %3330, %v2641_v22  }
0x1453   : > { %2652 = vperm.xlu1 %3329, %v2642_v23  }
0x14c6   : > { %v2637_v24 = vpop.permute.xlu1 %2636 }
0x14c7   : > { %v2640_v31 = vmul.f32 %v2637_v24, %v2614_v9 }
0x14ca   : > { %v2632_v26 = vpop.permute.xlu1 %2631  ;;  %v2648_v27 = vpop.permute.xlu0 %2647 }
0x14cb   : > { %v2639_v28 = vmul.f32 %v2632_v26, %v2609_v12  ;;  %v2655_v29 = vmul.f32 %v2648_v27, %v2643_v25 }
0x14cd   : > { %v2657_v33 = vadd.f32 %v2655_v29, %v2639_v28 }
0x14ce   : > { %v2653_v35 = vpop.permute.xlu1 %2652 }
0x14cf   : > { %v2659_v36 = vsel %vm1547_vm5, %v2657_v33, %v3338_v20  ;;  %v2656_v37 = vmul.f32 %v2653_v35, %v2644_v30 }
0x14d0   : > { %v2662_v38 = vsel %vm2661_vm8, %v2659_v36, 0.0 }
0x14d1   : > { %2664 = vst [vmem:[%s3509_s25] sm:$0xff] %v2662_v38  ;;  %v2658_v39 = vadd.f32 %v2656_v37, %v2640_v31 }
0x14d3   : > { %v2660_v40 = vsel %vm1547_vm5, %v2658_v39, %v3336_v19 }
0x14d4   : > { %v2663_v41 = vsel %vm2661_vm8, %v2660_v40, 0.0 }
0x14d5   : > { %2665 = vst [vmem:[%s3509_s25 + $0x8] sm:$0xff] %v2663_v41 }
0x14d6 PF: > { %s4018_s17 = sld [smem:[#allocation6_spill]] }
0x14d7   : > { %s4019_s21 = sld [smem:[#allocation4_spill]] }
0x14d8   : > { %s4020_s22 = sld [smem:[#allocation5_spill]] }
0x14d9   : > { %s4021_s23 = sld [smem:[#allocation7_spill]] }
0x14da   : > { %s4022_s24 = sld [smem:[#allocation8_spill]] }
0x14dc   : > { %s22_s25 = sadd.s32 1, %s4018_s17  }
0x14dd   : > { %p19_p10 = scmp.ge.s32.totalorder %s22_s25, 10  }
0x14df   :  { %21 = sbr.rel (!%p19_p10) target bundleno = 4 (0x4), region = 119 }

</bundles_post_ra>
